<compile_context>
chip_gen: v7x
topology: tpu7x:2x2x1
jax: 0.10.0
libtpu: 0.0.40
codegen_flags: <defaults>
</compile_context>

<pallas_src>
import functools

import jax
import jax.numpy as jnp
from jax.experimental import pallas as pl
from jax.experimental.pallas import tpu as pltpu

_VMEM_LIMIT = 32 * 1024 * 1024  # safe scoped limit on v5e/v6e/v7x


# ----------------------------------------------------------------------------
# Pallas kernel 1: fused 2-layer relational graph network (+ optional mean pool)
#   grid = (ng,): one grid step processes gb whole graphs via block-diagonal
#   relational adjacencies.  No reduction axis, no accumulator scratch.
# ----------------------------------------------------------------------------
def _rgn_kernel(h_ref, a_ref, w1_ref, w2_ref, out_ref, *, gb, n_nodes, n_rel, pool):
    # h_ref : [gb*N, Din]            bf16 node features (graphs stacked along rows)
    # a_ref : [1, R, gb*N, gb*N]     bf16 block-diagonal relational adjacencies
    # w1_ref: [R+1, Din, D1]         bf16, relation 0..R-1 then self-loop weight
    # w2_ref: [R+1, D1,  D2]         bf16
    # out_ref: pool ? [gb, D2] : [gb*N, D2]   f32
    def layer(h_bf, w_ref, relu):
        # Self-loop contribution (analytic -- no N x N matmul, lane-aligned result).
        out = jnp.dot(h_bf, w_ref[n_rel], preferred_element_type=jnp.float32)
        # Relational aggregation: one block-diag MXU matmul per relation, all bf16.
        for r in range(n_rel):
            msg = jnp.dot(h_bf, w_ref[r], preferred_element_type=jnp.float32)
            out = out + jnp.dot(a_ref[0, r], msg.astype(jnp.bfloat16),
                                preferred_element_type=jnp.float32)
        return jnp.maximum(out, 0.0) if relu else out

    h1 = layer(h_ref[...], w1_ref, relu=True)                 # hidden layer (ReLU)
    h2 = layer(h1.astype(jnp.bfloat16), w2_ref, relu=False)   # output layer

    if pool:
        # Per-graph mean over nodes fused here (saves an HBM round trip).
        d2 = h2.shape[-1]
        out_ref[...] = jnp.mean(h2.reshape(gb, n_nodes, d2), axis=1).astype(out_ref.dtype)
        # TODO(synk): a lane-dense [1, gb*D2] output slab would avoid masked vst at
        # D2<128, but requires an in-kernel sublane->lane flatten; skipped for safety.
    else:
        out_ref[...] = h2.astype(out_ref.dtype)


def _block_diag_adj(adj, gb):
    """adj [G, R, N, N] 0/1 -> [G//gb, R, gb*N, gb*N] block-diagonal (plain JAX glue)."""
    G, R, N, _ = adj.shape
    ng = G // gb
    a = adj.reshape(ng, gb, R, N, N).transpose(0, 2, 1, 3, 4)          # [ng,R,gb,N,N]
    eye = jnp.eye(gb, dtype=adj.dtype)
    bd = jnp.einsum('grbmn,bc->grbmcn', a, eye)                        # zero off-diag
    return bd.reshape(ng, R, gb * N, gb * N)


def rgn_forward(node_feat, adj, w1, w2, *, pool):
    """node_feat: [G, N, Din] f32; adj: [G, R, N, N] (0/1, no self-loop slice);
    w1: [R+1, Din, D1]; w2: [R+1, D1, D2] (last relation index = self-loop weight).
    Returns pooled [G, D2] if pool else [G, N, D2]."""
    G, N, Din = node_feat.shape
    R = adj.shape[1]
    assert w1.shape[0] == R + 1 and w2.shape[0] == R + 1
    D1, D2 = w1.shape[-1], w2.shape[-1]

    # Largest divisor of G such that the fused block-diag adjacency fits one native
    # MXU tile (<=256 wide) -- this also keeps the VMEM footprint tiny on every
    # generation (incl. v7x's 64 MiB).  For the demo sizes this gives grid=(1,),
    # which is optimal on single-TC v5e/v6e (no per-step overhead).
    gb = 1
    for d in range(1, G + 1):
        if G % d == 0 and d * N <= 256:
            gb = d
    ng = G // gb
    # TODO(synk): on v7x, prefer an even ng > 1 (2-way "parallel" grid) once sizes grow.

    h2d = node_feat.reshape(G * N, Din).astype(jnp.bfloat16)
    adj_bd = _block_diag_adj(adj, gb).astype(jnp.bfloat16)             # 0/1 exact in bf16
    w1_b = w1.astype(jnp.bfloat16)
    w2_b = w2.astype(jnp.bfloat16)

    if pool:
        out_shape = jax.ShapeDtypeStruct((G, D2), jnp.float32)
        out_spec = pl.BlockSpec((gb, D2), lambda i: (i, 0))
    else:
        out_shape = jax.ShapeDtypeStruct((G * N, D2), jnp.float32)
        out_spec = pl.BlockSpec((gb * N, D2), lambda i: (i, 0))

    out = pl.pallas_call(
        functools.partial(_rgn_kernel, gb=gb, n_nodes=N, n_rel=R, pool=pool),
        out_shape=out_shape,
        grid_spec=pltpu.PrefetchScalarGridSpec(
            num_scalar_prefetch=0,
            grid=(ng,),
            in_specs=[
                pl.BlockSpec((gb * N, Din), lambda i: (i, 0)),
                pl.BlockSpec((1, R, gb * N, gb * N), lambda i: (i, 0, 0, 0)),
                pl.BlockSpec((R + 1, Din, D1), lambda i: (0, 0, 0)),
                pl.BlockSpec((R + 1, D1, D2), lambda i: (0, 0, 0)),
            ],
            out_specs=out_spec,
        ),
        compiler_params=pltpu.CompilerParams(
            dimension_semantics=("parallel",),
            vmem_limit_bytes=_VMEM_LIMIT),
    )(h2d, adj_bd, w1_b, w2_b)

    if pool:
        return out                                                      # [G, D2]
    return out.reshape(G, N, D2)


# ----------------------------------------------------------------------------
# Pallas kernel 2: GRU recurrence (PyTorch nn.GRU semantics, zero initial state)
#   grid = (1,): the whole recurrence runs in one grid step; the hoisted input
#   projection xwi [T,3,B,H] is VMEM-resident; T is statically unrolled; the
#   hidden state is a carried value (no scratch, no per-step grid overhead).
#   Gates are addressed on a leading dim (no sub-128-lane slicing).
# ----------------------------------------------------------------------------
def _gru_kernel(xwi_ref, wh_ref, bh_ref, out_ref, *, t_steps, batch, hidden):
    # xwi_ref: [T, 3, B, H]  f32   (x_t @ W_ih[g] + b_ih[g], gate g on a leading dim)
    # wh_ref : [3, H, H]     f32
    # bh_ref : [3, 1, H]     f32
    # out_ref: [T, B, H]     f32
    h = jnp.zeros((batch, hidden), jnp.float32)
    # TODO(synk): for large T switch to lax.fori_loop to bound trace size.
    for t in range(t_steps):
        gh_r = jnp.dot(h, wh_ref[0], preferred_element_type=jnp.float32) + bh_ref[0]
        gh_z = jnp.dot(h, wh_ref[1], preferred_element_type=jnp.float32) + bh_ref[1]
        gh_n = jnp.dot(h, wh_ref[2], preferred_element_type=jnp.float32) + bh_ref[2]
        r = jax.nn.sigmoid(xwi_ref[t, 0] + gh_r)
        z = jax.nn.sigmoid(xwi_ref[t, 1] + gh_z)
        n = jnp.tanh(xwi_ref[t, 2] + r * gh_n)
        h = (1.0 - z) * n + z * h
        out_ref[t] = h


def gru_forward(x_seq, wi, wh, bi, bh):
    """x_seq: [T, B, In] -> hidden sequence [T, B, H] (PyTorch nn.GRU, 1 layer).
    wi: [3, In, H]; wh: [3, H, H]; bi, bh: [3, 1, H]  (gate order r, z, n)."""
    T, B, _ = x_seq.shape
    H = wh.shape[-1]

    # Hoist the input projection out of the serial recurrence: one batched matmul,
    # with the gate index kept as a leading dim so the kernel never lane-slices.
    xwi = jnp.einsum('tbi,gih->tgbh', x_seq, wi) + bi[None]            # [T, 3, B, H]

    return pl.pallas_call(
        functools.partial(_gru_kernel, t_steps=T, batch=B, hidden=H),
        out_shape=jax.ShapeDtypeStruct((T, B, H), jnp.float32),
        grid_spec=pltpu.PrefetchScalarGridSpec(
            num_scalar_prefetch=0,
            grid=(1,),
            in_specs=[
                pl.BlockSpec((T, 3, B, H), lambda i: (0, 0, 0, 0)),
                pl.BlockSpec((3, H, H), lambda i: (0, 0, 0)),
                pl.BlockSpec((3, 1, H), lambda i: (0, 0, 0)),
            ],
            out_specs=pl.BlockSpec((T, B, H), lambda i: (0, 0, 0)),
        ),
        compiler_params=pltpu.CompilerParams(
            dimension_semantics=("arbitrary",),
            vmem_limit_bytes=_VMEM_LIMIT),
    )(xwi, wh, bh)


# ----------------------------------------------------------------------------
# Module wrappers (parameter containers + plain-JAX glue)
# ----------------------------------------------------------------------------
class RelationalGraphNetwork:
    """Two-layer relational GNN: ReLU on the hidden layer, identity on output.
    The self-loop relation (last weight index) is applied analytically."""

    def __init__(self, key, num_relations, dims):
        # dims: [input_node_dim, hidden_node_dim, output_node_dim]
        assert len(dims) == 3  # TODO(synk): generalize fused kernel beyond 2 layers.
        self.num_relations = num_relations          # includes self-loop weight
        k1, k2 = jax.random.split(key)

        def init_w(k, din, dout):
            scale = 1.0 / jnp.sqrt(jnp.float32(din * num_relations))
            return scale * jax.random.normal(k, (num_relations, din, dout), jnp.float32)

        self.w1 = init_w(k1, dims[0], dims[1])
        self.w2 = init_w(k2, dims[1], dims[2])

    def __call__(self, graph_adj, node_feat, pool=False):
        # graph_adj: [G, R, N, N] (relational only), node_feat: [G, N, Din]
        return rgn_forward(node_feat, graph_adj, self.w1, self.w2, pool=pool)


class RNNEncoder:
    """Per-step graph encoding + mean pool per graph (fused in-kernel) + GRU."""

    def __init__(self, gru_params, one_step_encoder):
        self.wi, self.wh, self.bi, self.bh = gru_params
        self.one_step_encoder = one_step_encoder

    def __call__(self, num_time_steps, hist_graph, hist_feature):
        # hist_graph: [B, T, R, N, N], hist_feature: [B, T, N, Din]
        B, T, N, Din = hist_feature.shape
        assert T == num_time_steps
        R = hist_graph.shape[2]
        g_flat = hist_graph.reshape(B * T, R, N, N)
        f_flat = hist_feature.reshape(B * T, N, Din)
        pooled = self.one_step_encoder(g_flat, f_flat, pool=True)      # [B*T, Dnode]
        seq = pooled.reshape(B, T, -1).transpose(1, 0, 2)              # [T, B, Dnode]
        h_seq = gru_forward(seq, self.wi, self.wh, self.bi, self.bh)   # [T, B, H]
        h_enc_out = h_seq.transpose(1, 0, 2)                           # [B, T, H]
        h_enc_hidden = h_seq[-1]                                       # [B, H]
        return h_enc_out, h_enc_hidden


def _init_gru_params(key, in_dim, hidden):
    k1, k2, k3, k4 = jax.random.split(key, 4)
    s = 1.0 / jnp.sqrt(jnp.float32(hidden))
    wi = jax.random.uniform(k1, (3, in_dim, hidden), jnp.float32, -s, s)
    wh = jax.random.uniform(k2, (3, hidden, hidden), jnp.float32, -s, s)
    bi = jax.random.uniform(k3, (3, 1, hidden), jnp.float32, -s, s)
    bh = jax.random.uniform(k4, (3, 1, hidden), jnp.float32, -s, s)
    return wi, wh, bi, bh


class MultiStepInputGraphNetwork:
    def __init__(self, key, *, num_relations, hist_in_dim, hist_node_out,
                 rnn_hidden, curr_in_dim, curr_node_out):
        k1, k2, k3 = jax.random.split(key, 3)
        self.hist_one_step_enc = RelationalGraphNetwork(
            k1, num_relations, [hist_in_dim, hist_node_out, hist_node_out])
        self.hist_encoder = RNNEncoder(
            _init_gru_params(k2, hist_node_out, rnn_hidden), self.hist_one_step_enc)
        self.curr_encoder = RelationalGraphNetwork(
            k3, num_relations, [curr_in_dim, curr_node_out, curr_node_out])
        self.out_dim = curr_node_out + rnn_hidden

    def __call__(self, num_time_steps, hist_graph, hist_feature,
                 curr_graph, curr_feature):
        # Issue the independent curr-encoder work BEFORE the sequential GRU so it can
        # overlap with the recurrence (second TensorCore on v7x / async dispatch).
        c_enc_out = self.curr_encoder(curr_graph, curr_feature)        # [B, Nc, Dout]

        h_enc_out, _ = self.hist_encoder(num_time_steps, hist_graph, hist_feature)
        recent_h_enc = h_enc_out[:, -1, :]                             # [B, H]

        B, Nc, Dout = c_enc_out.shape
        c_enc_out = c_enc_out.reshape(B * Nc, Dout)

        # Fixed node count per graph in this synthetic batch, so
        # repeat_interleave(counts) == repeat(recent, Nc, axis=0).
        # TODO(synk): ragged per-graph node counts (dgl.BatchedDGLGraph) need a
        # dynamic repeat_interleave; not expressible with static shapes here.
        recent_h_enc = jnp.repeat(recent_h_enc, Nc, axis=0)            # [B*Nc, H]

        return jnp.concatenate([recent_h_enc, c_enc_out], axis=1)


# ----------------------------------------------------------------------------
# Synthetic graph construction (self-loop handled analytically -> no eye slice)
# ----------------------------------------------------------------------------
def make_graph(key, prefix, num_relations, n_nodes):
    """Random binary relational adjacencies [..., R, N, N]."""
    return (jax.random.uniform(key, (*prefix, num_relations, n_nodes, n_nodes))
            < 0.3).astype(jnp.float32)


if __name__ == "__main__":
    key = jax.random.PRNGKey(0)
    k_model, k_hg, k_hf, k_cg, k_cf = jax.random.split(key, 5)

    B, T = 2, 4            # batch of graphs, history time steps
    N_h, N_c = 8, 8        # nodes per hist / curr graph
    R = 2                  # relation types (+1 implicit self-loop weight)
    D_h_in, D_c_in = 8, 8  # input node feature dims
    HIST_NODE_OUT = 16     # hist RGN output node dim (== RNN input size)
    RNN_HIDDEN = 32        # GRU hidden_size
    CURR_NODE_OUT = 16     # curr RGN output_node_dim

    model = MultiStepInputGraphNetwork(
        k_model, num_relations=R + 1,
        hist_in_dim=D_h_in, hist_node_out=HIST_NODE_OUT,
        rnn_hidden=RNN_HIDDEN, curr_in_dim=D_c_in, curr_node_out=CURR_NODE_OUT)

    hist_graph = make_graph(k_hg, (B, T), R, N_h)                 # [B,T,R,Nh,Nh]
    hist_feature = jax.random.normal(k_hf, (B, T, N_h, D_h_in), jnp.float32)
    curr_graph = make_graph(k_cg, (B,), R, N_c)                   # [B,R,Nc,Nc]
    curr_feature = jax.random.normal(k_cf, (B, N_c, D_c_in), jnp.float32)

    @jax.jit
    def fwd(hg, hf, cg, cf):
        return model(T, hg, hf, cg, cf)

    out = fwd(hist_graph, hist_feature, curr_graph, curr_feature)
    out = jax.block_until_ready(out)

    assert out.shape == (B * N_c, model.out_dim), out.shape
    assert bool(jnp.all(jnp.isfinite(out)))
    print("KERNEL_OK")
</pallas_src>

<mosaic_0001>
module attributes {stable_mosaic.version = 11 : i64} {
  func.func @_rgn_kernel(%arg0: i32, %arg1: memref<64x8xbf16, #tpu.memory_space<vmem>>, %arg2: memref<1x2x64x64xbf16, #tpu.memory_space<vmem>>, %arg3: memref<3x8x16xbf16, #tpu.memory_space<vmem>>, %arg4: memref<3x16x16xbf16, #tpu.memory_space<vmem>>, %arg5: memref<8x16xf32, #tpu.memory_space<vmem>>) attributes {dimension_semantics = [#tpu.dimension_semantics<parallel>], iteration_bounds = array<i64: 1>, scalar_prefetch = 0 : i64, scratch_operands = 0 : i64, tpu.core_type = #tpu.core_type<tc>, window_params = [{transform_indices = @transform_0, window_bounds = array<i64: 64, 8>}, {transform_indices = @transform_1, window_bounds = array<i64: 1, 2, 64, 64>}, {pipeline_mode = #tpu.pipeline_mode<synchronous>, transform_indices = @transform_2, window_bounds = array<i64: 3, 8, 16>}, {pipeline_mode = #tpu.pipeline_mode<synchronous>, transform_indices = @transform_3, window_bounds = array<i64: 3, 16, 16>}, {transform_indices = @transform_4, window_bounds = array<i64: 8, 16>}]} {
    %c0 = arith.constant 0 : index
    %c0_0 = arith.constant 0 : index
    %0 = vector.load %arg1[%c0, %c0_0] : memref<64x8xbf16, #tpu.memory_space<vmem>>, vector<64x8xbf16>
    %c2 = arith.constant 2 : index
    %c0_1 = arith.constant 0 : index
    %c0_2 = arith.constant 0 : index
    %1 = vector.load %arg3[%c2, %c0_1, %c0_2] : memref<3x8x16xbf16, #tpu.memory_space<vmem>>, vector<1x8x16xbf16>
    %2 = vector.shape_cast %1 : vector<1x8x16xbf16> to vector<8x16xbf16>
    %cst = arith.constant dense<0.000000e+00> : vector<64x16xf32>
    %3 = tpu.matmul %0, %2, %cst {dimension_numbers = #tpu.dot_dimension_numbers<[1], [0], [0], [1], [0, 0, 1, 1], [], []>} : vector<64x8xbf16>, vector<8x16xbf16>, vector<64x16xf32> -> vector<64x16xf32>
    %c0_3 = arith.constant 0 : index
    %c0_4 = arith.constant 0 : index
    %c0_5 = arith.constant 0 : index
    %4 = vector.load %arg3[%c0_3, %c0_4, %c0_5] : memref<3x8x16xbf16, #tpu.memory_space<vmem>>, vector<1x8x16xbf16>
    %5 = vector.shape_cast %4 : vector<1x8x16xbf16> to vector<8x16xbf16>
    %cst_6 = arith.constant dense<0.000000e+00> : vector<64x16xf32>
    %6 = tpu.matmul %0, %5, %cst_6 {dimension_numbers = #tpu.dot_dimension_numbers<[1], [0], [0], [1], [0, 0, 1, 1], [], []>} : vector<64x8xbf16>, vector<8x16xbf16>, vector<64x16xf32> -> vector<64x16xf32>
    %c0_7 = arith.constant 0 : index
    %c0_8 = arith.constant 0 : index
    %c0_9 = arith.constant 0 : index
    %c0_10 = arith.constant 0 : index
    %7 = vector.load %arg2[%c0_7, %c0_8, %c0_9, %c0_10] : memref<1x2x64x64xbf16, #tpu.memory_space<vmem>>, vector<1x1x64x64xbf16>
    %8 = vector.shape_cast %7 : vector<1x1x64x64xbf16> to vector<64x64xbf16>
    %9 = arith.truncf %6 : vector<64x16xf32> to vector<64x16xbf16>
    %cst_11 = arith.constant dense<0.000000e+00> : vector<64x16xf32>
    %10 = tpu.matmul %8, %9, %cst_11 {dimension_numbers = #tpu.dot_dimension_numbers<[1], [0], [0], [1], [0, 0, 1, 1], [], []>} : vector<64x64xbf16>, vector<64x16xbf16>, vector<64x16xf32> -> vector<64x16xf32>
    %11 = arith.addf %3, %10 : vector<64x16xf32>
    %c1 = arith.constant 1 : index
    %c0_12 = arith.constant 0 : index
    %c0_13 = arith.constant 0 : index
    %12 = vector.load %arg3[%c1, %c0_12, %c0_13] : memref<3x8x16xbf16, #tpu.memory_space<vmem>>, vector<1x8x16xbf16>
    %13 = vector.shape_cast %12 : vector<1x8x16xbf16> to vector<8x16xbf16>
    %cst_14 = arith.constant dense<0.000000e+00> : vector<64x16xf32>
    %14 = tpu.matmul %0, %13, %cst_14 {dimension_numbers = #tpu.dot_dimension_numbers<[1], [0], [0], [1], [0, 0, 1, 1], [], []>} : vector<64x8xbf16>, vector<8x16xbf16>, vector<64x16xf32> -> vector<64x16xf32>
    %c0_15 = arith.constant 0 : index
    %c1_16 = arith.constant 1 : index
    %c0_17 = arith.constant 0 : index
    %c0_18 = arith.constant 0 : index
    %15 = vector.load %arg2[%c0_15, %c1_16, %c0_17, %c0_18] : memref<1x2x64x64xbf16, #tpu.memory_space<vmem>>, vector<1x1x64x64xbf16>
    %16 = vector.shape_cast %15 : vector<1x1x64x64xbf16> to vector<64x64xbf16>
    %17 = arith.truncf %14 : vector<64x16xf32> to vector<64x16xbf16>
    %cst_19 = arith.constant dense<0.000000e+00> : vector<64x16xf32>
    %18 = tpu.matmul %16, %17, %cst_19 {dimension_numbers = #tpu.dot_dimension_numbers<[1], [0], [0], [1], [0, 0, 1, 1], [], []>} : vector<64x64xbf16>, vector<64x16xbf16>, vector<64x16xf32> -> vector<64x16xf32>
    %19 = arith.addf %11, %18 : vector<64x16xf32>
    %cst_20 = arith.constant 0.000000e+00 : f32
    %20 = vector.broadcast %cst_20 : f32 to vector<64x16xf32>
    %21 = arith.maximumf %19, %20 : vector<64x16xf32>
    %22 = arith.truncf %21 : vector<64x16xf32> to vector<64x16xbf16>
    %c2_21 = arith.constant 2 : index
    %c0_22 = arith.constant 0 : index
    %c0_23 = arith.constant 0 : index
    %23 = vector.load %arg4[%c2_21, %c0_22, %c0_23] : memref<3x16x16xbf16, #tpu.memory_space<vmem>>, vector<1x16x16xbf16>
    %24 = vector.shape_cast %23 : vector<1x16x16xbf16> to vector<16x16xbf16>
    %cst_24 = arith.constant dense<0.000000e+00> : vector<64x16xf32>
    %25 = tpu.matmul %22, %24, %cst_24 {dimension_numbers = #tpu.dot_dimension_numbers<[1], [0], [0], [1], [0, 0, 1, 1], [], []>} : vector<64x16xbf16>, vector<16x16xbf16>, vector<64x16xf32> -> vector<64x16xf32>
    %c0_25 = arith.constant 0 : index
    %c0_26 = arith.constant 0 : index
    %c0_27 = arith.constant 0 : index
    %26 = vector.load %arg4[%c0_25, %c0_26, %c0_27] : memref<3x16x16xbf16, #tpu.memory_space<vmem>>, vector<1x16x16xbf16>
    %27 = vector.shape_cast %26 : vector<1x16x16xbf16> to vector<16x16xbf16>
    %cst_28 = arith.constant dense<0.000000e+00> : vector<64x16xf32>
    %28 = tpu.matmul %22, %27, %cst_28 {dimension_numbers = #tpu.dot_dimension_numbers<[1], [0], [0], [1], [0, 0, 1, 1], [], []>} : vector<64x16xbf16>, vector<16x16xbf16>, vector<64x16xf32> -> vector<64x16xf32>
    %c0_29 = arith.constant 0 : index
    %c0_30 = arith.constant 0 : index
    %c0_31 = arith.constant 0 : index
    %c0_32 = arith.constant 0 : index
    %29 = vector.load %arg2[%c0_29, %c0_30, %c0_31, %c0_32] : memref<1x2x64x64xbf16, #tpu.memory_space<vmem>>, vector<1x1x64x64xbf16>
    %30 = vector.shape_cast %29 : vector<1x1x64x64xbf16> to vector<64x64xbf16>
    %31 = arith.truncf %28 : vector<64x16xf32> to vector<64x16xbf16>
    %cst_33 = arith.constant dense<0.000000e+00> : vector<64x16xf32>
    %32 = tpu.matmul %30, %31, %cst_33 {dimension_numbers = #tpu.dot_dimension_numbers<[1], [0], [0], [1], [0, 0, 1, 1], [], []>} : vector<64x64xbf16>, vector<64x16xbf16>, vector<64x16xf32> -> vector<64x16xf32>
    %33 = arith.addf %25, %32 : vector<64x16xf32>
    %c1_34 = arith.constant 1 : index
    %c0_35 = arith.constant 0 : index
    %c0_36 = arith.constant 0 : index
    %34 = vector.load %arg4[%c1_34, %c0_35, %c0_36] : memref<3x16x16xbf16, #tpu.memory_space<vmem>>, vector<1x16x16xbf16>
    %35 = vector.shape_cast %34 : vector<1x16x16xbf16> to vector<16x16xbf16>
    %cst_37 = arith.constant dense<0.000000e+00> : vector<64x16xf32>
    %36 = tpu.matmul %22, %35, %cst_37 {dimension_numbers = #tpu.dot_dimension_numbers<[1], [0], [0], [1], [0, 0, 1, 1], [], []>} : vector<64x16xbf16>, vector<16x16xbf16>, vector<64x16xf32> -> vector<64x16xf32>
    %c0_38 = arith.constant 0 : index
    %c1_39 = arith.constant 1 : index
    %c0_40 = arith.constant 0 : index
    %c0_41 = arith.constant 0 : index
    %37 = vector.load %arg2[%c0_38, %c1_39, %c0_40, %c0_41] : memref<1x2x64x64xbf16, #tpu.memory_space<vmem>>, vector<1x1x64x64xbf16>
    %38 = vector.shape_cast %37 : vector<1x1x64x64xbf16> to vector<64x64xbf16>
    %39 = arith.truncf %36 : vector<64x16xf32> to vector<64x16xbf16>
    %cst_42 = arith.constant dense<0.000000e+00> : vector<64x16xf32>
    %40 = tpu.matmul %38, %39, %cst_42 {dimension_numbers = #tpu.dot_dimension_numbers<[1], [0], [0], [1], [0, 0, 1, 1], [], []>} : vector<64x64xbf16>, vector<64x16xbf16>, vector<64x16xf32> -> vector<64x16xf32>
    %41 = arith.addf %33, %40 : vector<64x16xf32>
    %42 = vector.shape_cast %41 : vector<64x16xf32> to vector<8x8x16xf32>
    %cst_43 = arith.constant dense<0.000000e+00> : vector<8x16xf32>
    %43 = vector.multi_reduction <add>, %42, %cst_43 [1] : vector<8x8x16xf32> to vector<8x16xf32>
    %cst_44 = arith.constant 8.000000e+00 : f32
    %44 = vector.broadcast %cst_44 : f32 to vector<8x16xf32>
    %45 = arith.divf %43, %44 : vector<8x16xf32>
    %c0_45 = arith.constant 0 : index
    %c0_46 = arith.constant 0 : index
    %46 = vector.load %arg5[%c0_45, %c0_46] : memref<8x16xf32, #tpu.memory_space<vmem>>, vector<8x16xf32>
    tpu.vector_store %arg5[%c0_45, %c0_46], %45 {strides = array<i32>} : memref<8x16xf32, #tpu.memory_space<vmem>>, vector<8x16xf32>,
    return
  }
  func.func @transform_0(%arg0: i32) -> (i32, i32) {
    %c0_i32 = arith.constant 0 : i32
    %c0_i32_0 = arith.constant 0 : i32
    return %arg0, %c0_i32 : i32, i32
  }
  func.func @transform_1(%arg0: i32) -> (i32, i32, i32, i32) {
    %c0_i32 = arith.constant 0 : i32
    %c0_i32_0 = arith.constant 0 : i32
    %c0_i32_1 = arith.constant 0 : i32
    %c0_i32_2 = arith.constant 0 : i32
    return %arg0, %c0_i32, %c0_i32_0, %c0_i32_1 : i32, i32, i32, i32
  }
  func.func @transform_2(%arg0: i32) -> (i32, i32, i32) {
    %c0_i32 = arith.constant 0 : i32
    %c0_i32_0 = arith.constant 0 : i32
    %c0_i32_1 = arith.constant 0 : i32
    %c0_i32_2 = arith.constant 0 : i32
    return %c0_i32, %c0_i32_0, %c0_i32_1 : i32, i32, i32
  }
  func.func @transform_3(%arg0: i32) -> (i32, i32, i32) {
    %c0_i32 = arith.constant 0 : i32
    %c0_i32_0 = arith.constant 0 : i32
    %c0_i32_1 = arith.constant 0 : i32
    %c0_i32_2 = arith.constant 0 : i32
    return %c0_i32, %c0_i32_0, %c0_i32_1 : i32, i32, i32
  }
  func.func @transform_4(%arg0: i32) -> (i32, i32) {
    %c0_i32 = arith.constant 0 : i32
    %c0_i32_0 = arith.constant 0 : i32
    return %arg0, %c0_i32 : i32, i32
  }
}

module attributes {stable_mosaic.version = 11 : i64} {
  func.func @_gru_kernel(%arg0: i32, %arg1: memref<4x3x2x32xf32, #tpu.memory_space<vmem>>, %arg2: memref<3x32x32xf32, #tpu.memory_space<vmem>>, %arg3: memref<3x1x32xf32, #tpu.memory_space<vmem>>, %arg4: memref<4x2x32xf32, #tpu.memory_space<vmem>>) attributes {dimension_semantics = [#tpu.dimension_semantics<arbitrary>], iteration_bounds = array<i64: 1>, scalar_prefetch = 0 : i64, scratch_operands = 0 : i64, tpu.core_type = #tpu.core_type<tc>, window_params = [{pipeline_mode = #tpu.pipeline_mode<synchronous>, transform_indices = @transform_0, window_bounds = array<i64: 4, 3, 2, 32>}, {pipeline_mode = #tpu.pipeline_mode<synchronous>, transform_indices = @transform_1, window_bounds = array<i64: 3, 32, 32>}, {pipeline_mode = #tpu.pipeline_mode<synchronous>, transform_indices = @transform_2, window_bounds = array<i64: 3, 1, 32>}, {pipeline_mode = #tpu.pipeline_mode<synchronous>, transform_indices = @transform_3, window_bounds = array<i64: 4, 2, 32>}]} {
    %cst = arith.constant 0.000000e+00 : f32
    %0 = vector.broadcast %cst : f32 to vector<2x32xf32>
    %c0 = arith.constant 0 : index
    %c0_0 = arith.constant 0 : index
    %c0_1 = arith.constant 0 : index
    %1 = vector.load %arg2[%c0, %c0_0, %c0_1] : memref<3x32x32xf32, #tpu.memory_space<vmem>>, vector<1x32x32xf32>
    %2 = vector.shape_cast %1 : vector<1x32x32xf32> to vector<32x32xf32>
    %cst_2 = arith.constant dense<0.000000e+00> : vector<2x32xf32>
    %3 = tpu.matmul %0, %2, %cst_2 {dimension_numbers = #tpu.dot_dimension_numbers<[1], [0], [0], [1], [0, 0, 1, 1], [], []>} : vector<2x32xf32>, vector<32x32xf32>, vector<2x32xf32> -> vector<2x32xf32>
    %c0_3 = arith.constant 0 : index
    %c0_4 = arith.constant 0 : index
    %c0_5 = arith.constant 0 : index
    %4 = vector.load %arg3[%c0_3, %c0_4, %c0_5] : memref<3x1x32xf32, #tpu.memory_space<vmem>>, vector<1x1x32xf32>
    %5 = vector.shape_cast %4 : vector<1x1x32xf32> to vector<1x32xf32>
    %6 = vector.broadcast %5 : vector<1x32xf32> to vector<2x32xf32>
    %7 = arith.addf %3, %6 : vector<2x32xf32>
    %c1 = arith.constant 1 : index
    %c0_6 = arith.constant 0 : index
    %c0_7 = arith.constant 0 : index
    %8 = vector.load %arg2[%c1, %c0_6, %c0_7] : memref<3x32x32xf32, #tpu.memory_space<vmem>>, vector<1x32x32xf32>
    %9 = vector.shape_cast %8 : vector<1x32x32xf32> to vector<32x32xf32>
    %cst_8 = arith.constant dense<0.000000e+00> : vector<2x32xf32>
    %10 = tpu.matmul %0, %9, %cst_8 {dimension_numbers = #tpu.dot_dimension_numbers<[1], [0], [0], [1], [0, 0, 1, 1], [], []>} : vector<2x32xf32>, vector<32x32xf32>, vector<2x32xf32> -> vector<2x32xf32>
    %c1_9 = arith.constant 1 : index
    %c0_10 = arith.constant 0 : index
    %c0_11 = arith.constant 0 : index
    %11 = vector.load %arg3[%c1_9, %c0_10, %c0_11] : memref<3x1x32xf32, #tpu.memory_space<vmem>>, vector<1x1x32xf32>
    %12 = vector.shape_cast %11 : vector<1x1x32xf32> to vector<1x32xf32>
    %13 = vector.broadcast %12 : vector<1x32xf32> to vector<2x32xf32>
    %14 = arith.addf %10, %13 : vector<2x32xf32>
    %c2 = arith.constant 2 : index
    %c0_12 = arith.constant 0 : index
    %c0_13 = arith.constant 0 : index
    %15 = vector.load %arg2[%c2, %c0_12, %c0_13] : memref<3x32x32xf32, #tpu.memory_space<vmem>>, vector<1x32x32xf32>
    %16 = vector.shape_cast %15 : vector<1x32x32xf32> to vector<32x32xf32>
    %cst_14 = arith.constant dense<0.000000e+00> : vector<2x32xf32>
    %17 = tpu.matmul %0, %16, %cst_14 {dimension_numbers = #tpu.dot_dimension_numbers<[1], [0], [0], [1], [0, 0, 1, 1], [], []>} : vector<2x32xf32>, vector<32x32xf32>, vector<2x32xf32> -> vector<2x32xf32>
    %c2_15 = arith.constant 2 : index
    %c0_16 = arith.constant 0 : index
    %c0_17 = arith.constant 0 : index
    %18 = vector.load %arg3[%c2_15, %c0_16, %c0_17] : memref<3x1x32xf32, #tpu.memory_space<vmem>>, vector<1x1x32xf32>
    %19 = vector.shape_cast %18 : vector<1x1x32xf32> to vector<1x32xf32>
    %20 = vector.broadcast %19 : vector<1x32xf32> to vector<2x32xf32>
    %21 = arith.addf %17, %20 : vector<2x32xf32>
    %c0_18 = arith.constant 0 : index
    %c0_19 = arith.constant 0 : index
    %c0_20 = arith.constant 0 : index
    %c0_21 = arith.constant 0 : index
    %22 = vector.load %arg1[%c0_18, %c0_19, %c0_20, %c0_21] : memref<4x3x2x32xf32, #tpu.memory_space<vmem>>, vector<1x1x2x32xf32>
    %23 = vector.shape_cast %22 : vector<1x1x2x32xf32> to vector<2x32xf32>
    %24 = arith.addf %23, %7 : vector<2x32xf32>
    %25 = arith.negf %24 : vector<2x32xf32>
    %26 = math.exp %25 : vector<2x32xf32>
    %cst_22 = arith.constant 1.000000e+00 : f32
    %27 = vector.broadcast %cst_22 : f32 to vector<2x32xf32>
    %28 = arith.addf %27, %26 : vector<2x32xf32>
    %29 = arith.divf %27, %28 : vector<2x32xf32>
    %c0_23 = arith.constant 0 : index
    %c1_24 = arith.constant 1 : index
    %c0_25 = arith.constant 0 : index
    %c0_26 = arith.constant 0 : index
    %30 = vector.load %arg1[%c0_23, %c1_24, %c0_25, %c0_26] : memref<4x3x2x32xf32, #tpu.memory_space<vmem>>, vector<1x1x2x32xf32>
    %31 = vector.shape_cast %30 : vector<1x1x2x32xf32> to vector<2x32xf32>
    %32 = arith.addf %31, %14 : vector<2x32xf32>
    %33 = arith.negf %32 : vector<2x32xf32>
    %34 = math.exp %33 : vector<2x32xf32>
    %cst_27 = arith.constant 1.000000e+00 : f32
    %35 = vector.broadcast %cst_27 : f32 to vector<2x32xf32>
    %36 = arith.addf %35, %34 : vector<2x32xf32>
    %37 = arith.divf %35, %36 : vector<2x32xf32>
    %c0_28 = arith.constant 0 : index
    %c2_29 = arith.constant 2 : index
    %c0_30 = arith.constant 0 : index
    %c0_31 = arith.constant 0 : index
    %38 = vector.load %arg1[%c0_28, %c2_29, %c0_30, %c0_31] : memref<4x3x2x32xf32, #tpu.memory_space<vmem>>, vector<1x1x2x32xf32>
    %39 = vector.shape_cast %38 : vector<1x1x2x32xf32> to vector<2x32xf32>
    %40 = arith.mulf %29, %21 : vector<2x32xf32>
    %41 = arith.addf %39, %40 : vector<2x32xf32>
    %42 = math.tanh %41 : vector<2x32xf32>
    %cst_32 = arith.constant 1.000000e+00 : f32
    %43 = vector.broadcast %cst_32 : f32 to vector<2x32xf32>
    %44 = arith.subf %43, %37 : vector<2x32xf32>
    %45 = arith.mulf %44, %42 : vector<2x32xf32>
    %46 = arith.mulf %37, %0 : vector<2x32xf32>
    %47 = arith.addf %45, %46 : vector<2x32xf32>
    %c0_33 = arith.constant 0 : index
    %c0_34 = arith.constant 0 : index
    %c0_35 = arith.constant 0 : index
    %48 = vector.load %arg4[%c0_33, %c0_34, %c0_35] : memref<4x2x32xf32, #tpu.memory_space<vmem>>, vector<1x2x32xf32>
    %49 = vector.shape_cast %48 : vector<1x2x32xf32> to vector<2x32xf32>
    %50 = vector.shape_cast %47 : vector<2x32xf32> to vector<1x2x32xf32>
    tpu.vector_store %arg4[%c0_33, %c0_34, %c0_35], %50 {strides = array<i32>} : memref<4x2x32xf32, #tpu.memory_space<vmem>>, vector<1x2x32xf32>,
    %c0_36 = arith.constant 0 : index
    %c0_37 = arith.constant 0 : index
    %c0_38 = arith.constant 0 : index
    %51 = vector.load %arg2[%c0_36, %c0_37, %c0_38] : memref<3x32x32xf32, #tpu.memory_space<vmem>>, vector<1x32x32xf32>
    %52 = vector.shape_cast %51 : vector<1x32x32xf32> to vector<32x32xf32>
    %cst_39 = arith.constant dense<0.000000e+00> : vector<2x32xf32>
    %53 = tpu.matmul %47, %52, %cst_39 {dimension_numbers = #tpu.dot_dimension_numbers<[1], [0], [0], [1], [0, 0, 1, 1], [], []>} : vector<2x32xf32>, vector<32x32xf32>, vector<2x32xf32> -> vector<2x32xf32>
    %c0_40 = arith.constant 0 : index
    %c0_41 = arith.constant 0 : index
    %c0_42 = arith.constant 0 : index
    %54 = vector.load %arg3[%c0_40, %c0_41, %c0_42] : memref<3x1x32xf32, #tpu.memory_space<vmem>>, vector<1x1x32xf32>
    %55 = vector.shape_cast %54 : vector<1x1x32xf32> to vector<1x32xf32>
    %56 = vector.broadcast %55 : vector<1x32xf32> to vector<2x32xf32>
    %57 = arith.addf %53, %56 : vector<2x32xf32>
    %c1_43 = arith.constant 1 : index
    %c0_44 = arith.constant 0 : index
    %c0_45 = arith.constant 0 : index
    %58 = vector.load %arg2[%c1_43, %c0_44, %c0_45] : memref<3x32x32xf32, #tpu.memory_space<vmem>>, vector<1x32x32xf32>
    %59 = vector.shape_cast %58 : vector<1x32x32xf32> to vector<32x32xf32>
    %cst_46 = arith.constant dense<0.000000e+00> : vector<2x32xf32>
    %60 = tpu.matmul %47, %59, %cst_46 {dimension_numbers = #tpu.dot_dimension_numbers<[1], [0], [0], [1], [0, 0, 1, 1], [], []>} : vector<2x32xf32>, vector<32x32xf32>, vector<2x32xf32> -> vector<2x32xf32>
    %c1_47 = arith.constant 1 : index
    %c0_48 = arith.constant 0 : index
    %c0_49 = arith.constant 0 : index
    %61 = vector.load %arg3[%c1_47, %c0_48, %c0_49] : memref<3x1x32xf32, #tpu.memory_space<vmem>>, vector<1x1x32xf32>
    %62 = vector.shape_cast %61 : vector<1x1x32xf32> to vector<1x32xf32>
    %63 = vector.broadcast %62 : vector<1x32xf32> to vector<2x32xf32>
    %64 = arith.addf %60, %63 : vector<2x32xf32>
    %c2_50 = arith.constant 2 : index
    %c0_51 = arith.constant 0 : index
    %c0_52 = arith.constant 0 : index
    %65 = vector.load %arg2[%c2_50, %c0_51, %c0_52] : memref<3x32x32xf32, #tpu.memory_space<vmem>>, vector<1x32x32xf32>
    %66 = vector.shape_cast %65 : vector<1x32x32xf32> to vector<32x32xf32>
    %cst_53 = arith.constant dense<0.000000e+00> : vector<2x32xf32>
    %67 = tpu.matmul %47, %66, %cst_53 {dimension_numbers = #tpu.dot_dimension_numbers<[1], [0], [0], [1], [0, 0, 1, 1], [], []>} : vector<2x32xf32>, vector<32x32xf32>, vector<2x32xf32> -> vector<2x32xf32>
    %c2_54 = arith.constant 2 : index
    %c0_55 = arith.constant 0 : index
    %c0_56 = arith.constant 0 : index
    %68 = vector.load %arg3[%c2_54, %c0_55, %c0_56] : memref<3x1x32xf32, #tpu.memory_space<vmem>>, vector<1x1x32xf32>
    %69 = vector.shape_cast %68 : vector<1x1x32xf32> to vector<1x32xf32>
    %70 = vector.broadcast %69 : vector<1x32xf32> to vector<2x32xf32>
    %71 = arith.addf %67, %70 : vector<2x32xf32>
    %c1_57 = arith.constant 1 : index
    %c0_58 = arith.constant 0 : index
    %c0_59 = arith.constant 0 : index
    %c0_60 = arith.constant 0 : index
    %72 = vector.load %arg1[%c1_57, %c0_58, %c0_59, %c0_60] : memref<4x3x2x32xf32, #tpu.memory_space<vmem>>, vector<1x1x2x32xf32>
    %73 = vector.shape_cast %72 : vector<1x1x2x32xf32> to vector<2x32xf32>
    %74 = arith.addf %73, %57 : vector<2x32xf32>
    %75 = arith.negf %74 : vector<2x32xf32>
    %76 = math.exp %75 : vector<2x32xf32>
    %cst_61 = arith.constant 1.000000e+00 : f32
    %77 = vector.broadcast %cst_61 : f32 to vector<2x32xf32>
    %78 = arith.addf %77, %76 : vector<2x32xf32>
    %79 = arith.divf %77, %78 : vector<2x32xf32>
    %c1_62 = arith.constant 1 : index
    %c1_63 = arith.constant 1 : index
    %c0_64 = arith.constant 0 : index
    %c0_65 = arith.constant 0 : index
    %80 = vector.load %arg1[%c1_62, %c1_63, %c0_64, %c0_65] : memref<4x3x2x32xf32, #tpu.memory_space<vmem>>, vector<1x1x2x32xf32>
    %81 = vector.shape_cast %80 : vector<1x1x2x32xf32> to vector<2x32xf32>
    %82 = arith.addf %81, %64 : vector<2x32xf32>
    %83 = arith.negf %82 : vector<2x32xf32>
    %84 = math.exp %83 : vector<2x32xf32>
    %cst_66 = arith.constant 1.000000e+00 : f32
    %85 = vector.broadcast %cst_66 : f32 to vector<2x32xf32>
    %86 = arith.addf %85, %84 : vector<2x32xf32>
    %87 = arith.divf %85, %86 : vector<2x32xf32>
    %c1_67 = arith.constant 1 : index
    %c2_68 = arith.constant 2 : index
    %c0_69 = arith.constant 0 : index
    %c0_70 = arith.constant 0 : index
    %88 = vector.load %arg1[%c1_67, %c2_68, %c0_69, %c0_70] : memref<4x3x2x32xf32, #tpu.memory_space<vmem>>, vector<1x1x2x32xf32>
    %89 = vector.shape_cast %88 : vector<1x1x2x32xf32> to vector<2x32xf32>
    %90 = arith.mulf %79, %71 : vector<2x32xf32>
    %91 = arith.addf %89, %90 : vector<2x32xf32>
    %92 = math.tanh %91 : vector<2x32xf32>
    %cst_71 = arith.constant 1.000000e+00 : f32
    %93 = vector.broadcast %cst_71 : f32 to vector<2x32xf32>
    %94 = arith.subf %93, %87 : vector<2x32xf32>
    %95 = arith.mulf %94, %92 : vector<2x32xf32>
    %96 = arith.mulf %87, %47 : vector<2x32xf32>
    %97 = arith.addf %95, %96 : vector<2x32xf32>
    %c1_72 = arith.constant 1 : index
    %c0_73 = arith.constant 0 : index
    %c0_74 = arith.constant 0 : index
    %98 = vector.load %arg4[%c1_72, %c0_73, %c0_74] : memref<4x2x32xf32, #tpu.memory_space<vmem>>, vector<1x2x32xf32>
    %99 = vector.shape_cast %98 : vector<1x2x32xf32> to vector<2x32xf32>
    %100 = vector.shape_cast %97 : vector<2x32xf32> to vector<1x2x32xf32>
    tpu.vector_store %arg4[%c1_72, %c0_73, %c0_74], %100 {strides = array<i32>} : memref<4x2x32xf32, #tpu.memory_space<vmem>>, vector<1x2x32xf32>,
    %c0_75 = arith.constant 0 : index
    %c0_76 = arith.constant 0 : index
    %c0_77 = arith.constant 0 : index
    %101 = vector.load %arg2[%c0_75, %c0_76, %c0_77] : memref<3x32x32xf32, #tpu.memory_space<vmem>>, vector<1x32x32xf32>
    %102 = vector.shape_cast %101 : vector<1x32x32xf32> to vector<32x32xf32>
    %cst_78 = arith.constant dense<0.000000e+00> : vector<2x32xf32>
    %103 = tpu.matmul %97, %102, %cst_78 {dimension_numbers = #tpu.dot_dimension_numbers<[1], [0], [0], [1], [0, 0, 1, 1], [], []>} : vector<2x32xf32>, vector<32x32xf32>, vector<2x32xf32> -> vector<2x32xf32>
    %c0_79 = arith.constant 0 : index
    %c0_80 = arith.constant 0 : index
    %c0_81 = arith.constant 0 : index
    %104 = vector.load %arg3[%c0_79, %c0_80, %c0_81] : memref<3x1x32xf32, #tpu.memory_space<vmem>>, vector<1x1x32xf32>
    %105 = vector.shape_cast %104 : vector<1x1x32xf32> to vector<1x32xf32>
    %106 = vector.broadcast %105 : vector<1x32xf32> to vector<2x32xf32>
    %107 = arith.addf %103, %106 : vector<2x32xf32>
    %c1_82 = arith.constant 1 : index
    %c0_83 = arith.constant 0 : index
    %c0_84 = arith.constant 0 : index
    %108 = vector.load %arg2[%c1_82, %c0_83, %c0_84] : memref<3x32x32xf32, #tpu.memory_space<vmem>>, vector<1x32x32xf32>
    %109 = vector.shape_cast %108 : vector<1x32x32xf32> to vector<32x32xf32>
    %cst_85 = arith.constant dense<0.000000e+00> : vector<2x32xf32>
    %110 = tpu.matmul %97, %109, %cst_85 {dimension_numbers = #tpu.dot_dimension_numbers<[1], [0], [0], [1], [0, 0, 1, 1], [], []>} : vector<2x32xf32>, vector<32x32xf32>, vector<2x32xf32> -> vector<2x32xf32>
    %c1_86 = arith.constant 1 : index
    %c0_87 = arith.constant 0 : index
    %c0_88 = arith.constant 0 : index
    %111 = vector.load %arg3[%c1_86, %c0_87, %c0_88] : memref<3x1x32xf32, #tpu.memory_space<vmem>>, vector<1x1x32xf32>
    %112 = vector.shape_cast %111 : vector<1x1x32xf32> to vector<1x32xf32>
    %113 = vector.broadcast %112 : vector<1x32xf32> to vector<2x32xf32>
    %114 = arith.addf %110, %113 : vector<2x32xf32>
    %c2_89 = arith.constant 2 : index
    %c0_90 = arith.constant 0 : index
    %c0_91 = arith.constant 0 : index
    %115 = vector.load %arg2[%c2_89, %c0_90, %c0_91] : memref<3x32x32xf32, #tpu.memory_space<vmem>>, vector<1x32x32xf32>
    %116 = vector.shape_cast %115 : vector<1x32x32xf32> to vector<32x32xf32>
    %cst_92 = arith.constant dense<0.000000e+00> : vector<2x32xf32>
    %117 = tpu.matmul %97, %116, %cst_92 {dimension_numbers = #tpu.dot_dimension_numbers<[1], [0], [0], [1], [0, 0, 1, 1], [], []>} : vector<2x32xf32>, vector<32x32xf32>, vector<2x32xf32> -> vector<2x32xf32>
    %c2_93 = arith.constant 2 : index
    %c0_94 = arith.constant 0 : index
    %c0_95 = arith.constant 0 : index
    %118 = vector.load %arg3[%c2_93, %c0_94, %c0_95] : memref<3x1x32xf32, #tpu.memory_space<vmem>>, vector<1x1x32xf32>
    %119 = vector.shape_cast %118 : vector<1x1x32xf32> to vector<1x32xf32>
    %120 = vector.broadcast %119 : vector<1x32xf32> to vector<2x32xf32>
    %121 = arith.addf %117, %120 : vector<2x32xf32>
    %c2_96 = arith.constant 2 : index
    %c0_97 = arith.constant 0 : index
    %c0_98 = arith.constant 0 : index
    %c0_99 = arith.constant 0 : index
    %122 = vector.load %arg1[%c2_96, %c0_97, %c0_98, %c0_99] : memref<4x3x2x32xf32, #tpu.memory_space<vmem>>, vector<1x1x2x32xf32>
    %123 = vector.shape_cast %122 : vector<1x1x2x32xf32> to vector<2x32xf32>
    %124 = arith.addf %123, %107 : vector<2x32xf32>
    %125 = arith.negf %124 : vector<2x32xf32>
    %126 = math.exp %125 : vector<2x32xf32>
    %cst_100 = arith.constant 1.000000e+00 : f32
    %127 = vector.broadcast %cst_100 : f32 to vector<2x32xf32>
    %128 = arith.addf %127, %126 : vector<2x32xf32>
    %129 = arith.divf %127, %128 : vector<2x32xf32>
    %c2_101 = arith.constant 2 : index
    %c1_102 = arith.constant 1 : index
    %c0_103 = arith.constant 0 : index
    %c0_104 = arith.constant 0 : index
    %130 = vector.load %arg1[%c2_101, %c1_102, %c0_103, %c0_104] : memref<4x3x2x32xf32, #tpu.memory_space<vmem>>, vector<1x1x2x32xf32>
    %131 = vector.shape_cast %130 : vector<1x1x2x32xf32> to vector<2x32xf32>
    %132 = arith.addf %131, %114 : vector<2x32xf32>
    %133 = arith.negf %132 : vector<2x32xf32>
    %134 = math.exp %133 : vector<2x32xf32>
    %cst_105 = arith.constant 1.000000e+00 : f32
    %135 = vector.broadcast %cst_105 : f32 to vector<2x32xf32>
    %136 = arith.addf %135, %134 : vector<2x32xf32>
    %137 = arith.divf %135, %136 : vector<2x32xf32>
    %c2_106 = arith.constant 2 : index
    %c2_107 = arith.constant 2 : index
    %c0_108 = arith.constant 0 : index
    %c0_109 = arith.constant 0 : index
    %138 = vector.load %arg1[%c2_106, %c2_107, %c0_108, %c0_109] : memref<4x3x2x32xf32, #tpu.memory_space<vmem>>, vector<1x1x2x32xf32>
    %139 = vector.shape_cast %138 : vector<1x1x2x32xf32> to vector<2x32xf32>
    %140 = arith.mulf %129, %121 : vector<2x32xf32>
    %141 = arith.addf %139, %140 : vector<2x32xf32>
    %142 = math.tanh %141 : vector<2x32xf32>
    %cst_110 = arith.constant 1.000000e+00 : f32
    %143 = vector.broadcast %cst_110 : f32 to vector<2x32xf32>
    %144 = arith.subf %143, %137 : vector<2x32xf32>
    %145 = arith.mulf %144, %142 : vector<2x32xf32>
    %146 = arith.mulf %137, %97 : vector<2x32xf32>
    %147 = arith.addf %145, %146 : vector<2x32xf32>
    %c2_111 = arith.constant 2 : index
    %c0_112 = arith.constant 0 : index
    %c0_113 = arith.constant 0 : index
    %148 = vector.load %arg4[%c2_111, %c0_112, %c0_113] : memref<4x2x32xf32, #tpu.memory_space<vmem>>, vector<1x2x32xf32>
    %149 = vector.shape_cast %148 : vector<1x2x32xf32> to vector<2x32xf32>
    %150 = vector.shape_cast %147 : vector<2x32xf32> to vector<1x2x32xf32>
    tpu.vector_store %arg4[%c2_111, %c0_112, %c0_113], %150 {strides = array<i32>} : memref<4x2x32xf32, #tpu.memory_space<vmem>>, vector<1x2x32xf32>,
    %c0_114 = arith.constant 0 : index
    %c0_115 = arith.constant 0 : index
    %c0_116 = arith.constant 0 : index
    %151 = vector.load %arg2[%c0_114, %c0_115, %c0_116] : memref<3x32x32xf32, #tpu.memory_space<vmem>>, vector<1x32x32xf32>
    %152 = vector.shape_cast %151 : vector<1x32x32xf32> to vector<32x32xf32>
    %cst_117 = arith.constant dense<0.000000e+00> : vector<2x32xf32>
    %153 = tpu.matmul %147, %152, %cst_117 {dimension_numbers = #tpu.dot_dimension_numbers<[1], [0], [0], [1], [0, 0, 1, 1], [], []>} : vector<2x32xf32>, vector<32x32xf32>, vector<2x32xf32> -> vector<2x32xf32>
    %c0_118 = arith.constant 0 : index
    %c0_119 = arith.constant 0 : index
    %c0_120 = arith.constant 0 : index
    %154 = vector.load %arg3[%c0_118, %c0_119, %c0_120] : memref<3x1x32xf32, #tpu.memory_space<vmem>>, vector<1x1x32xf32>
    %155 = vector.shape_cast %154 : vector<1x1x32xf32> to vector<1x32xf32>
    %156 = vector.broadcast %155 : vector<1x32xf32> to vector<2x32xf32>
    %157 = arith.addf %153, %156 : vector<2x32xf32>
    %c1_121 = arith.constant 1 : index
    %c0_122 = arith.constant 0 : index
    %c0_123 = arith.constant 0 : index
    %158 = vector.load %arg2[%c1_121, %c0_122, %c0_123] : memref<3x32x32xf32, #tpu.memory_space<vmem>>, vector<1x32x32xf32>
    %159 = vector.shape_cast %158 : vector<1x32x32xf32> to vector<32x32xf32>
    %cst_124 = arith.constant dense<0.000000e+00> : vector<2x32xf32>
    %160 = tpu.matmul %147, %159, %cst_124 {dimension_numbers = #tpu.dot_dimension_numbers<[1], [0], [0], [1], [0, 0, 1, 1], [], []>} : vector<2x32xf32>, vector<32x32xf32>, vector<2x32xf32> -> vector<2x32xf32>
    %c1_125 = arith.constant 1 : index
    %c0_126 = arith.constant 0 : index
    %c0_127 = arith.constant 0 : index
    %161 = vector.load %arg3[%c1_125, %c0_126, %c0_127] : memref<3x1x32xf32, #tpu.memory_space<vmem>>, vector<1x1x32xf32>
    %162 = vector.shape_cast %161 : vector<1x1x32xf32> to vector<1x32xf32>
    %163 = vector.broadcast %162 : vector<1x32xf32> to vector<2x32xf32>
    %164 = arith.addf %160, %163 : vector<2x32xf32>
    %c2_128 = arith.constant 2 : index
    %c0_129 = arith.constant 0 : index
    %c0_130 = arith.constant 0 : index
    %165 = vector.load %arg2[%c2_128, %c0_129, %c0_130] : memref<3x32x32xf32, #tpu.memory_space<vmem>>, vector<1x32x32xf32>
    %166 = vector.shape_cast %165 : vector<1x32x32xf32> to vector<32x32xf32>
    %cst_131 = arith.constant dense<0.000000e+00> : vector<2x32xf32>
    %167 = tpu.matmul %147, %166, %cst_131 {dimension_numbers = #tpu.dot_dimension_numbers<[1], [0], [0], [1], [0, 0, 1, 1], [], []>} : vector<2x32xf32>, vector<32x32xf32>, vector<2x32xf32> -> vector<2x32xf32>
    %c2_132 = arith.constant 2 : index
    %c0_133 = arith.constant 0 : index
    %c0_134 = arith.constant 0 : index
    %168 = vector.load %arg3[%c2_132, %c0_133, %c0_134] : memref<3x1x32xf32, #tpu.memory_space<vmem>>, vector<1x1x32xf32>
    %169 = vector.shape_cast %168 : vector<1x1x32xf32> to vector<1x32xf32>
    %170 = vector.broadcast %169 : vector<1x32xf32> to vector<2x32xf32>
    %171 = arith.addf %167, %170 : vector<2x32xf32>
    %c3 = arith.constant 3 : index
    %c0_135 = arith.constant 0 : index
    %c0_136 = arith.constant 0 : index
    %c0_137 = arith.constant 0 : index
    %172 = vector.load %arg1[%c3, %c0_135, %c0_136, %c0_137] : memref<4x3x2x32xf32, #tpu.memory_space<vmem>>, vector<1x1x2x32xf32>
    %173 = vector.shape_cast %172 : vector<1x1x2x32xf32> to vector<2x32xf32>
    %174 = arith.addf %173, %157 : vector<2x32xf32>
    %175 = arith.negf %174 : vector<2x32xf32>
    %176 = math.exp %175 : vector<2x32xf32>
    %cst_138 = arith.constant 1.000000e+00 : f32
    %177 = vector.broadcast %cst_138 : f32 to vector<2x32xf32>
    %178 = arith.addf %177, %176 : vector<2x32xf32>
    %179 = arith.divf %177, %178 : vector<2x32xf32>
    %c3_139 = arith.constant 3 : index
    %c1_140 = arith.constant 1 : index
    %c0_141 = arith.constant 0 : index
    %c0_142 = arith.constant 0 : index
    %180 = vector.load %arg1[%c3_139, %c1_140, %c0_141, %c0_142] : memref<4x3x2x32xf32, #tpu.memory_space<vmem>>, vector<1x1x2x32xf32>
    %181 = vector.shape_cast %180 : vector<1x1x2x32xf32> to vector<2x32xf32>
    %182 = arith.addf %181, %164 : vector<2x32xf32>
    %183 = arith.negf %182 : vector<2x32xf32>
    %184 = math.exp %183 : vector<2x32xf32>
    %cst_143 = arith.constant 1.000000e+00 : f32
    %185 = vector.broadcast %cst_143 : f32 to vector<2x32xf32>
    %186 = arith.addf %185, %184 : vector<2x32xf32>
    %187 = arith.divf %185, %186 : vector<2x32xf32>
    %c3_144 = arith.constant 3 : index
    %c2_145 = arith.constant 2 : index
    %c0_146 = arith.constant 0 : index
    %c0_147 = arith.constant 0 : index
    %188 = vector.load %arg1[%c3_144, %c2_145, %c0_146, %c0_147] : memref<4x3x2x32xf32, #tpu.memory_space<vmem>>, vector<1x1x2x32xf32>
    %189 = vector.shape_cast %188 : vector<1x1x2x32xf32> to vector<2x32xf32>
    %190 = arith.mulf %179, %171 : vector<2x32xf32>
    %191 = arith.addf %189, %190 : vector<2x32xf32>
    %192 = math.tanh %191 : vector<2x32xf32>
    %cst_148 = arith.constant 1.000000e+00 : f32
    %193 = vector.broadcast %cst_148 : f32 to vector<2x32xf32>
    %194 = arith.subf %193, %187 : vector<2x32xf32>
    %195 = arith.mulf %194, %192 : vector<2x32xf32>
    %196 = arith.mulf %187, %147 : vector<2x32xf32>
    %197 = arith.addf %195, %196 : vector<2x32xf32>
    %c3_149 = arith.constant 3 : index
    %c0_150 = arith.constant 0 : index
    %c0_151 = arith.constant 0 : index
    %198 = vector.load %arg4[%c3_149, %c0_150, %c0_151] : memref<4x2x32xf32, #tpu.memory_space<vmem>>, vector<1x2x32xf32>
    %199 = vector.shape_cast %198 : vector<1x2x32xf32> to vector<2x32xf32>
    %200 = vector.shape_cast %197 : vector<2x32xf32> to vector<1x2x32xf32>
    tpu.vector_store %arg4[%c3_149, %c0_150, %c0_151], %200 {strides = array<i32>} : memref<4x2x32xf32, #tpu.memory_space<vmem>>, vector<1x2x32xf32>,
    return
  }
  func.func @transform_0(%arg0: i32) -> (i32, i32, i32, i32) {
    %c0_i32 = arith.constant 0 : i32
    %c0_i32_0 = arith.constant 0 : i32
    %c0_i32_1 = arith.constant 0 : i32
    %c0_i32_2 = arith.constant 0 : i32
    %c0_i32_3 = arith.constant 0 : i32
    return %c0_i32, %c0_i32_0, %c0_i32_1, %c0_i32_2 : i32, i32, i32, i32
  }
  func.func @transform_1(%arg0: i32) -> (i32, i32, i32) {
    %c0_i32 = arith.constant 0 : i32
    %c0_i32_0 = arith.constant 0 : i32
    %c0_i32_1 = arith.constant 0 : i32
    %c0_i32_2 = arith.constant 0 : i32
    return %c0_i32, %c0_i32_0, %c0_i32_1 : i32, i32, i32
  }
  func.func @transform_2(%arg0: i32) -> (i32, i32, i32) {
    %c0_i32 = arith.constant 0 : i32
    %c0_i32_0 = arith.constant 0 : i32
    %c0_i32_1 = arith.constant 0 : i32
    %c0_i32_2 = arith.constant 0 : i32
    return %c0_i32, %c0_i32_0, %c0_i32_1 : i32, i32, i32
  }
  func.func @transform_3(%arg0: i32) -> (i32, i32, i32) {
    %c0_i32 = arith.constant 0 : i32
    %c0_i32_0 = arith.constant 0 : i32
    %c0_i32_1 = arith.constant 0 : i32
    %c0_i32_2 = arith.constant 0 : i32
    return %c0_i32, %c0_i32_0, %c0_i32_1 : i32, i32, i32
  }
}

module attributes {stable_mosaic.version = 11 : i64} {
  func.func @_rgn_kernel(%arg0: i32, %arg1: memref<16x8xbf16, #tpu.memory_space<vmem>>, %arg2: memref<1x2x16x16xbf16, #tpu.memory_space<vmem>>, %arg3: memref<3x8x16xbf16, #tpu.memory_space<vmem>>, %arg4: memref<3x16x16xbf16, #tpu.memory_space<vmem>>, %arg5: memref<16x16xf32, #tpu.memory_space<vmem>>) attributes {dimension_semantics = [#tpu.dimension_semantics<parallel>], iteration_bounds = array<i64: 1>, scalar_prefetch = 0 : i64, scratch_operands = 0 : i64, tpu.core_type = #tpu.core_type<tc>, window_params = [{transform_indices = @transform_0, window_bounds = array<i64: 16, 8>}, {transform_indices = @transform_1, window_bounds = array<i64: 1, 2, 16, 16>}, {pipeline_mode = #tpu.pipeline_mode<synchronous>, transform_indices = @transform_2, window_bounds = array<i64: 3, 8, 16>}, {pipeline_mode = #tpu.pipeline_mode<synchronous>, transform_indices = @transform_3, window_bounds = array<i64: 3, 16, 16>}, {transform_indices = @transform_4, window_bounds = array<i64: 16, 16>}]} {
    %c0 = arith.constant 0 : index
    %c0_0 = arith.constant 0 : index
    %0 = vector.load %arg1[%c0, %c0_0] : memref<16x8xbf16, #tpu.memory_space<vmem>>, vector<16x8xbf16>
    %c2 = arith.constant 2 : index
    %c0_1 = arith.constant 0 : index
    %c0_2 = arith.constant 0 : index
    %1 = vector.load %arg3[%c2, %c0_1, %c0_2] : memref<3x8x16xbf16, #tpu.memory_space<vmem>>, vector<1x8x16xbf16>
    %2 = vector.shape_cast %1 : vector<1x8x16xbf16> to vector<8x16xbf16>
    %cst = arith.constant dense<0.000000e+00> : vector<16x16xf32>
    %3 = tpu.matmul %0, %2, %cst {dimension_numbers = #tpu.dot_dimension_numbers<[1], [0], [0], [1], [0, 0, 1, 1], [], []>} : vector<16x8xbf16>, vector<8x16xbf16>, vector<16x16xf32> -> vector<16x16xf32>
    %c0_3 = arith.constant 0 : index
    %c0_4 = arith.constant 0 : index
    %c0_5 = arith.constant 0 : index
    %4 = vector.load %arg3[%c0_3, %c0_4, %c0_5] : memref<3x8x16xbf16, #tpu.memory_space<vmem>>, vector<1x8x16xbf16>
    %5 = vector.shape_cast %4 : vector<1x8x16xbf16> to vector<8x16xbf16>
    %cst_6 = arith.constant dense<0.000000e+00> : vector<16x16xf32>
    %6 = tpu.matmul %0, %5, %cst_6 {dimension_numbers = #tpu.dot_dimension_numbers<[1], [0], [0], [1], [0, 0, 1, 1], [], []>} : vector<16x8xbf16>, vector<8x16xbf16>, vector<16x16xf32> -> vector<16x16xf32>
    %c0_7 = arith.constant 0 : index
    %c0_8 = arith.constant 0 : index
    %c0_9 = arith.constant 0 : index
    %c0_10 = arith.constant 0 : index
    %7 = vector.load %arg2[%c0_7, %c0_8, %c0_9, %c0_10] : memref<1x2x16x16xbf16, #tpu.memory_space<vmem>>, vector<1x1x16x16xbf16>
    %8 = vector.shape_cast %7 : vector<1x1x16x16xbf16> to vector<16x16xbf16>
    %9 = arith.truncf %6 : vector<16x16xf32> to vector<16x16xbf16>
    %cst_11 = arith.constant dense<0.000000e+00> : vector<16x16xf32>
    %10 = tpu.matmul %8, %9, %cst_11 {dimension_numbers = #tpu.dot_dimension_numbers<[1], [0], [0], [1], [0, 0, 1, 1], [], []>} : vector<16x16xbf16>, vector<16x16xbf16>, vector<16x16xf32> -> vector<16x16xf32>
    %11 = arith.addf %3, %10 : vector<16x16xf32>
    %c1 = arith.constant 1 : index
    %c0_12 = arith.constant 0 : index
    %c0_13 = arith.constant 0 : index
    %12 = vector.load %arg3[%c1, %c0_12, %c0_13] : memref<3x8x16xbf16, #tpu.memory_space<vmem>>, vector<1x8x16xbf16>
    %13 = vector.shape_cast %12 : vector<1x8x16xbf16> to vector<8x16xbf16>
    %cst_14 = arith.constant dense<0.000000e+00> : vector<16x16xf32>
    %14 = tpu.matmul %0, %13, %cst_14 {dimension_numbers = #tpu.dot_dimension_numbers<[1], [0], [0], [1], [0, 0, 1, 1], [], []>} : vector<16x8xbf16>, vector<8x16xbf16>, vector<16x16xf32> -> vector<16x16xf32>
    %c0_15 = arith.constant 0 : index
    %c1_16 = arith.constant 1 : index
    %c0_17 = arith.constant 0 : index
    %c0_18 = arith.constant 0 : index
    %15 = vector.load %arg2[%c0_15, %c1_16, %c0_17, %c0_18] : memref<1x2x16x16xbf16, #tpu.memory_space<vmem>>, vector<1x1x16x16xbf16>
    %16 = vector.shape_cast %15 : vector<1x1x16x16xbf16> to vector<16x16xbf16>
    %17 = arith.truncf %14 : vector<16x16xf32> to vector<16x16xbf16>
    %cst_19 = arith.constant dense<0.000000e+00> : vector<16x16xf32>
    %18 = tpu.matmul %16, %17, %cst_19 {dimension_numbers = #tpu.dot_dimension_numbers<[1], [0], [0], [1], [0, 0, 1, 1], [], []>} : vector<16x16xbf16>, vector<16x16xbf16>, vector<16x16xf32> -> vector<16x16xf32>
    %19 = arith.addf %11, %18 : vector<16x16xf32>
    %cst_20 = arith.constant 0.000000e+00 : f32
    %20 = vector.broadcast %cst_20 : f32 to vector<16x16xf32>
    %21 = arith.maximumf %19, %20 : vector<16x16xf32>
    %22 = arith.truncf %21 : vector<16x16xf32> to vector<16x16xbf16>
    %c2_21 = arith.constant 2 : index
    %c0_22 = arith.constant 0 : index
    %c0_23 = arith.constant 0 : index
    %23 = vector.load %arg4[%c2_21, %c0_22, %c0_23] : memref<3x16x16xbf16, #tpu.memory_space<vmem>>, vector<1x16x16xbf16>
    %24 = vector.shape_cast %23 : vector<1x16x16xbf16> to vector<16x16xbf16>
    %cst_24 = arith.constant dense<0.000000e+00> : vector<16x16xf32>
    %25 = tpu.matmul %22, %24, %cst_24 {dimension_numbers = #tpu.dot_dimension_numbers<[1], [0], [0], [1], [0, 0, 1, 1], [], []>} : vector<16x16xbf16>, vector<16x16xbf16>, vector<16x16xf32> -> vector<16x16xf32>
    %c0_25 = arith.constant 0 : index
    %c0_26 = arith.constant 0 : index
    %c0_27 = arith.constant 0 : index
    %26 = vector.load %arg4[%c0_25, %c0_26, %c0_27] : memref<3x16x16xbf16, #tpu.memory_space<vmem>>, vector<1x16x16xbf16>
    %27 = vector.shape_cast %26 : vector<1x16x16xbf16> to vector<16x16xbf16>
    %cst_28 = arith.constant dense<0.000000e+00> : vector<16x16xf32>
    %28 = tpu.matmul %22, %27, %cst_28 {dimension_numbers = #tpu.dot_dimension_numbers<[1], [0], [0], [1], [0, 0, 1, 1], [], []>} : vector<16x16xbf16>, vector<16x16xbf16>, vector<16x16xf32> -> vector<16x16xf32>
    %c0_29 = arith.constant 0 : index
    %c0_30 = arith.constant 0 : index
    %c0_31 = arith.constant 0 : index
    %c0_32 = arith.constant 0 : index
    %29 = vector.load %arg2[%c0_29, %c0_30, %c0_31, %c0_32] : memref<1x2x16x16xbf16, #tpu.memory_space<vmem>>, vector<1x1x16x16xbf16>
    %30 = vector.shape_cast %29 : vector<1x1x16x16xbf16> to vector<16x16xbf16>
    %31 = arith.truncf %28 : vector<16x16xf32> to vector<16x16xbf16>
    %cst_33 = arith.constant dense<0.000000e+00> : vector<16x16xf32>
    %32 = tpu.matmul %30, %31, %cst_33 {dimension_numbers = #tpu.dot_dimension_numbers<[1], [0], [0], [1], [0, 0, 1, 1], [], []>} : vector<16x16xbf16>, vector<16x16xbf16>, vector<16x16xf32> -> vector<16x16xf32>
    %33 = arith.addf %25, %32 : vector<16x16xf32>
    %c1_34 = arith.constant 1 : index
    %c0_35 = arith.constant 0 : index
    %c0_36 = arith.constant 0 : index
    %34 = vector.load %arg4[%c1_34, %c0_35, %c0_36] : memref<3x16x16xbf16, #tpu.memory_space<vmem>>, vector<1x16x16xbf16>
    %35 = vector.shape_cast %34 : vector<1x16x16xbf16> to vector<16x16xbf16>
    %cst_37 = arith.constant dense<0.000000e+00> : vector<16x16xf32>
    %36 = tpu.matmul %22, %35, %cst_37 {dimension_numbers = #tpu.dot_dimension_numbers<[1], [0], [0], [1], [0, 0, 1, 1], [], []>} : vector<16x16xbf16>, vector<16x16xbf16>, vector<16x16xf32> -> vector<16x16xf32>
    %c0_38 = arith.constant 0 : index
    %c1_39 = arith.constant 1 : index
    %c0_40 = arith.constant 0 : index
    %c0_41 = arith.constant 0 : index
    %37 = vector.load %arg2[%c0_38, %c1_39, %c0_40, %c0_41] : memref<1x2x16x16xbf16, #tpu.memory_space<vmem>>, vector<1x1x16x16xbf16>
    %38 = vector.shape_cast %37 : vector<1x1x16x16xbf16> to vector<16x16xbf16>
    %39 = arith.truncf %36 : vector<16x16xf32> to vector<16x16xbf16>
    %cst_42 = arith.constant dense<0.000000e+00> : vector<16x16xf32>
    %40 = tpu.matmul %38, %39, %cst_42 {dimension_numbers = #tpu.dot_dimension_numbers<[1], [0], [0], [1], [0, 0, 1, 1], [], []>} : vector<16x16xbf16>, vector<16x16xbf16>, vector<16x16xf32> -> vector<16x16xf32>
    %41 = arith.addf %33, %40 : vector<16x16xf32>
    %c0_43 = arith.constant 0 : index
    %c0_44 = arith.constant 0 : index
    %42 = vector.load %arg5[%c0_43, %c0_44] : memref<16x16xf32, #tpu.memory_space<vmem>>, vector<16x16xf32>
    tpu.vector_store %arg5[%c0_43, %c0_44], %41 {strides = array<i32>} : memref<16x16xf32, #tpu.memory_space<vmem>>, vector<16x16xf32>,
    return
  }
  func.func @transform_0(%arg0: i32) -> (i32, i32) {
    %c0_i32 = arith.constant 0 : i32
    %c0_i32_0 = arith.constant 0 : i32
    return %arg0, %c0_i32 : i32, i32
  }
  func.func @transform_1(%arg0: i32) -> (i32, i32, i32, i32) {
    %c0_i32 = arith.constant 0 : i32
    %c0_i32_0 = arith.constant 0 : i32
    %c0_i32_1 = arith.constant 0 : i32
    %c0_i32_2 = arith.constant 0 : i32
    return %arg0, %c0_i32, %c0_i32_0, %c0_i32_1 : i32, i32, i32, i32
  }
  func.func @transform_2(%arg0: i32) -> (i32, i32, i32) {
    %c0_i32 = arith.constant 0 : i32
    %c0_i32_0 = arith.constant 0 : i32
    %c0_i32_1 = arith.constant 0 : i32
    %c0_i32_2 = arith.constant 0 : i32
    return %c0_i32, %c0_i32_0, %c0_i32_1 : i32, i32, i32
  }
  func.func @transform_3(%arg0: i32) -> (i32, i32, i32) {
    %c0_i32 = arith.constant 0 : i32
    %c0_i32_0 = arith.constant 0 : i32
    %c0_i32_1 = arith.constant 0 : i32
    %c0_i32_2 = arith.constant 0 : i32
    return %c0_i32, %c0_i32_0, %c0_i32_1 : i32, i32, i32
  }
  func.func @transform_4(%arg0: i32) -> (i32, i32) {
    %c0_i32 = arith.constant 0 : i32
    %c0_i32_0 = arith.constant 0 : i32
    return %arg0, %c0_i32 : i32, i32
  }
}

</mosaic_0001>

<bundles_post_ra>
// kernel: fwd.5
= control target key start
LH: loop header
LB: loop body
LE: loop exit
PB: predicated region body
PF: predicated region fallthrough
CT: control target
= control target key end

     0   :  { %v1512_v0 = vmov 0.0|0.0   ;;  %vm1513_vm0 = vmmov 0   ;;  %v1514_v4 = vmov 0.0   ;;  %vm25_vm1 = vcmask 261120   ;;  %s1746_s1 = inlined_call_operand.vmem [shape: f32[3,32,32], index: 1, kind: input, shape index: {}]   ;;  %s1747_s2 = inlined_call_operand.vmem [shape: f32[3,1,32], index: 2, kind: input, shape index: {}]   ;;  %s1748_s0 = inlined_call_operand.vmem [shape: f32[4,3,2,32], index: 0, kind: input, shape index: {}]   ;;  %s1749_s3 = inlined_call_operand.vmem [shape: f32[4,2,32], index: 3, kind: output, shape index: {}]  }
   0x1   :  { %1397 = vmatprep.subr.bf16.mxu0 %v1512_v0  ;;  %v14_v1 = vld [vmem:[%s1746_s1] sm:$0xff]  ;;  %v15_v2 = vld [vmem:[%s1746_s1 + $0x8] sm:$0xff]  ;;  %v16_v3 = vld [vmem:[%s1746_s1 + $0x10] sm:$0xff]  ;;  %1273 = vmatprep.mubr.msk.f32.mxu0 %vm1513_vm0, %v1514_v4  ;;  %vm291_vm2 = vcmask 254976  }
   0x2   :  { %v1547_v5 = vpack.c.bf16 %v15_v2, %v14_v1  ;;  %v17_v6 = vld [vmem:[%s1746_s1 + $0x18] sm:$0xff]  ;;  %1403 = vmatprep.subr.bf16.mxu1 %v1512_v0  ;;  %v1123_v7 = vld [vmem:[%s1746_s1 + $0x20] sm:$0xff]  ;;  %v1124_v8 = vld [vmem:[%s1746_s1 + $0x28] sm:$0xff]  ;;  %1284 = vmatprep.mubr.msk.f32.mxu1 %vm1513_vm0, %v1514_v4 }
   0x3   :  { %v1561_v9 = vpack.c.bf16 %v1124_v8, %v1123_v7  ;;  %v1125_v10 = vld [vmem:[%s1746_s1 + $0x30] sm:$0xff]  ;;  %v1126_v11 = vld [vmem:[%s1746_s1 + $0x38] sm:$0xff]  ;;  %v1570_v12 = vpack.c.bf16 %v17_v6, %v16_v3  ;;  %v1129_v14 = vld [vmem:[%s1746_s1 + $0x40] sm:$0xff] }
   0x4   :  { %1399 = vmatpush3.bf16.msra.mxu0 %v1547_v5  ;;  %v1574_v13 = vpack.c.bf16 %v1126_v11, %v1125_v10  ;;  %v1130_v15 = vld [vmem:[%s1746_s1 + $0x48] sm:$0xff]  ;;  %v1131_v17 = vld [vmem:[%s1746_s1 + $0x50] sm:$0xff]  ;;  %v1132_v18 = vld [vmem:[%s1746_s1 + $0x58] sm:$0xff] }
   0x5   :  { %1400 = vmatprep.subr.bf16.mxu0 %v1512_v0  ;;  %1405 = vmatpush3.bf16.msra.mxu1 %v1561_v9  ;;  %v1584_v16 = vpack.c.bf16 %v1130_v15, %v1129_v14  ;;  %v1598_v19 = vpack.c.bf16 %v1132_v18, %v1131_v17  ;;  %v1621_v20 = vld [vmem:[%s1747_s2] ss:$0 sm:$0xff]  ;;  %v1626_v21 = vld [vmem:[%s1747_s2 + $0x1] ss:$0 sm:$0xff]  ;;  %v1136_v27 = vld [vmem:[%s1748_s0 + $0x2] sm:$0x3] }
   0x6   :  { %1406 = vmatprep.subr.bf16.mxu1 %v1512_v0  ;;  %v265_v23 = vld [vmem:[%s1748_s0] sm:$0x3]  ;;  %v1639_v39 = vld [vmem:[%s1747_s2 + $0x2] ss:$0 sm:$0xff]  ;;  %v1138_v43 = vld [vmem:[%s1748_s0 + $0x4] sm:$0x3] }
   0x7   :  { %v1155_v53 = vld [vmem:[%s1748_s0 + $0x6] sm:$0x3]  ;;  %v1157_v60 = vld [vmem:[%s1748_s0 + $0x8] sm:$0x3]  ;;  %v1159_v14 = vld [vmem:[%s1748_s0 + $0xa] sm:$0x3] }
   0x8   :  { %1402 = vmatpush3.bf16.msra.mxu0 %v1570_v12 }
   0x9   :  { %1408 = vmatpush3.bf16.msra.mxu1 %v1574_v13  ;;  %1409 = vmatprep.subr.bf16.mxu0 %v1512_v0 }
   0xa   :  { %1415 = vmatprep.subr.bf16.mxu1 %v1512_v0 }
   0xb   :  { %1274 = vmatmul.mubr.f32.vlgmr.msra.gmra.mrb[0].mxu0 %v1514_v4 }
   0xc   :  { %1285 = vmatmul.mubr.f32.vlgmr.msra.gmra.mrb[0].mxu1 %v1514_v4  ;;  %1411 = vmatpush3.bf16.msra.mxu0 %v1584_v16 }
   0xd   :  { %1412 = vmatprep.subr.bf16.mxu0 %v1512_v0  ;;  %1295 = vmatprep.mubr.msk.f32.mxu0 %vm1513_vm0, %v1514_v4 }
   0xe   :  { %1417 = vmatpush3.bf16.msra.mxu1 %v1547_v5  ;;  %1306 = vmatprep.mubr.msk.f32.mxu1 %vm1513_vm0, %v1514_v4 }
   0xf   :  { %1418 = vmatprep.subr.bf16.mxu1 %v1512_v0 }
  0x10   :  { %1414 = vmatpush3.bf16.msra.mxu0 %v1598_v19 }
  0x11   :  { %1421 = vmatprep.subr.bf16.mxu0 %v1512_v0 }
  0x12   :  { %1420 = vmatpush3.bf16.msra.mxu1 %v1570_v12 }
  0x13   :  { %1296 = vmatmul.mubr.f32.vlgmr.msra.gmra.mrb[2].mxu0 %v1514_v4  ;;  %1427 = vmatprep.subr.bf16.mxu1 %v1512_v0 }
  0x14   :  { %1423 = vmatpush3.bf16.msra.mxu0 %v1561_v9  ;;  %1317 = vmatprep.mubr.msk.f32.mxu0 %vm1513_vm0, %v1514_v4 }
  0x15   :  { %1424 = vmatprep.subr.bf16.mxu0 %v1512_v0 }
  0x18   :  { %1426 = vmatpush3.bf16.msra.mxu0 %v1574_v13 }
  0x19   :  { %1433 = vmatprep.subr.bf16.mxu0 %v1512_v0 }
  0xde   :  { %v95_v22 = vpop.f32.mrb[0].mxu0 }
  0xdf   :  { %v96_v24 = vadd.f32 %v1621_v20, %v95_v22  ;;  %v1275_v25 = vpop.f32.mrb[1].mxu0  ;;  %v178_v26 = vpop.f32.mrb[0].mxu1 }
  0xe0   :  { %v179_v28 = vadd.f32 %v1626_v21, %v178_v26  ;;  %v1286_v29 = vpop.f32.mrb[1].mxu1 }
  0xe1   :  { %v266_v30 = vadd.f32 %v265_v23, %v96_v24 }
  0xe2   :  { %v275_v31 = vadd.f32 %v1136_v27, %v179_v28  ;;  %v1177_v27 = vld [vmem:[%s1748_s0 + $0xc] sm:$0x3] }
  0xe3   :  { %v1135_v32 = vmul.f32 -1.442695, %v266_v30 }
  0xe4   :  { %v1137_v33 = vmul.f32 -1.442695, %v275_v31 }
  0xe5   :  { %1472 = vpow2.f32 %v1135_v32  ;;  %v1179_v32 = vld [vmem:[%s1748_s0 + $0xe] sm:$0x3] }
  0xe6   :  { %v261_v34 = vpop.f32.mrb[2].mxu0  ;;  %1474 = vpow2.f32 %v1137_v33 }
  0xe7   :  { %v1297_v35 = vpop.f32.mrb[3].mxu0  ;;  %v262_v41 = vadd.f32 %v1639_v39, %v261_v34 }
  0xef   :  { %v1473_v36 = vpop.eup %1472 }
  0xf0   :  { %v270_v37 = vadd.f32 1.0, %v1473_v36  ;;  %v1475_v38 = vpop.eup %1474 }
  0xf1   :  { %v279_v40 = vadd.f32 1.0, %v1475_v38 }
  0xf2   :  { %1476 = vrcp.f32 %v270_v37 }
  0xf3   :  { %1478 = vrcp.f32 %v279_v40 }
  0xfc   :  { %v1477_v42 = vpop.eup %1476 }
  0xfd   :  { %v284_v44 = vmul.f32 %v1477_v42, %v262_v41  ;;  %v1479_v46 = vpop.eup %1478 }
  0xfe   :  { %v287_v47 = vsub.f32 1.0, %v1479_v46  ;;  %v289_v50 = vmul.f32 0.0, %v1479_v46 }
  0xff   :  { %v285_v45 = vadd.f32 %v1138_v43, %v284_v44  ;;  %v1181_v44 = vld [vmem:[%s1748_s0 + $0x10] sm:$0x3] }
 0x101   :  { %1480 = vtanh.f32 %v285_v45 }
 0x10b   :  { %v1481_v48 = vpop.eup %1480 }
 0x10c   :  { %v288_v49 = vmul.f32 %v1481_v48, %v287_v47 }
 0x10e   :  { %v290_v51 = vadd.f32 %v289_v50, %v288_v49 }
 0x110   :  { %292 = vst.msk [vmem:[%s1749_s3] sm:$0x3] %vm291_vm2, %v290_v51  ;;  %1307 = vmatmul.mubr.msk.f32.vlgmr.msra.gmra.mrb[2].mxu1 %vm25_vm1, %v290_v51  ;;  %1318 = vmatmul.mubr.msk.f32.vlgmr.msra.gmra.mrb[4].mxu0 %vm25_vm1, %v290_v51 }
 0x111   :  { %1429 = vmatpush3.bf16.msra.mxu1 %v1584_v16  ;;  %1328 = vmatprep.mubr.msk.f32.mxu1 %vm1513_vm0, %v1514_v4 }
 0x112   :  { %1430 = vmatprep.subr.bf16.mxu1 %v1512_v0  ;;  %1435 = vmatpush3.bf16.msra.mxu0 %v1547_v5 }
 0x113   :  { %1436 = vmatprep.subr.bf16.mxu0 %v1512_v0  ;;  %1339 = vmatprep.mubr.msk.f32.mxu0 %vm1513_vm0, %v1514_v4 }
 0x115   :  { %1432 = vmatpush3.bf16.msra.mxu1 %v1598_v19 }
 0x116   :  { %1439 = vmatprep.subr.bf16.mxu1 %v1512_v0  ;;  %1438 = vmatpush3.bf16.msra.mxu0 %v1570_v12 }
 0x117   :  { %1445 = vmatprep.subr.bf16.mxu0 %v1512_v0 }
 0x118   :  { %1329 = vmatmul.mubr.msk.f32.vlgmr.msra.gmra.mrb[4].mxu1 %vm25_vm1, %v290_v51 }
 0x119   :  { %1441 = vmatpush3.bf16.msra.mxu1 %v1561_v9  ;;  %1350 = vmatprep.mubr.msk.f32.mxu1 %vm1513_vm0, %v1514_v4 }
 0x11a   :  { %1442 = vmatprep.subr.bf16.mxu1 %v1512_v0 }
 0x11d   :  { %1444 = vmatpush3.bf16.msra.mxu1 %v1574_v13 }
 0x11e   :  { %1451 = vmatprep.subr.bf16.mxu1 %v1512_v0 }
 0x1e3   :  { %v373_v52 = vpop.f32.mrb[2].mxu1  ;;  %v454_v54 = vpop.f32.mrb[4].mxu0 }
 0x1e4   :  { %v374_v55 = vadd.f32 %v1621_v20, %v373_v52  ;;  %v1308_v56 = vpop.f32.mrb[3].mxu1  ;;  %v1319_v57 = vpop.f32.mrb[5].mxu0  ;;  %v455_v58 = vadd.f32 %v1626_v21, %v454_v54  ;;  %v1199_v54 = vld [vmem:[%s1748_s0 + $0x12] sm:$0x3] }
 0x1e6   :  { %v541_v59 = vadd.f32 %v1155_v53, %v374_v55  ;;  %v550_v62 = vadd.f32 %v1157_v60, %v455_v58 }
 0x1e8   :  { %v1156_v61 = vmul.f32 -1.442695, %v541_v59  ;;  %v1158_v2 = vmul.f32 -1.442695, %v550_v62 }
 0x1ea   :  { %1482 = vpow2.f32 %v1156_v61 }
 0x1eb   :  { %v535_v63 = vpop.f32.mrb[4].mxu1  ;;  %1484 = vpow2.f32 %v1158_v2 }
 0x1ec   :  { %v1330_v1 = vpop.f32.mrb[5].mxu1  ;;  %v536_v10 = vadd.f32 %v1639_v39, %v535_v63 }
 0x1f4   :  { %v1483_v3 = vpop.eup %1482 }
 0x1f5   :  { %v545_v6 = vadd.f32 1.0, %v1483_v3  ;;  %v1485_v7 = vpop.eup %1484 }
 0x1f6   :  { %v554_v8 = vadd.f32 1.0, %v1485_v7 }
 0x1f7   :  { %1486 = vrcp.f32 %v545_v6  ;;  %v1203_v6 = vld [vmem:[%s1748_s0 + $0x16] sm:$0x3] }
 0x1f8   :  { %1488 = vrcp.f32 %v554_v8 }
 0x201   :  { %v1487_v11 = vpop.eup %1486 }
 0x202   :  { %v559_v15 = vmul.f32 %v1487_v11, %v536_v10  ;;  %v1489_v18 = vpop.eup %1488 }
 0x203   :  { %v562_v22 = vsub.f32 1.0, %v1489_v18  ;;  %v564_v25 = vmul.f32 %v1489_v18, %v290_v51 }
 0x204   :  { %v560_v17 = vadd.f32 %v1159_v14, %v559_v15 }
 0x206   :  { %1490 = vtanh.f32 %v560_v17 }
 0x210   :  { %v1491_v23 = vpop.eup %1490 }
 0x211   :  { %v563_v24 = vmul.f32 %v1491_v23, %v562_v22 }
 0x213   :  { %v565_v26 = vadd.f32 %v564_v25, %v563_v24 }
 0x215   :  { %1160 = vst.msk [vmem:[%s1749_s3 + $0x2] sm:$0x3] %vm291_vm2, %v565_v26  ;;  %1340 = vmatmul.mubr.msk.f32.vlgmr.msra.gmra.mrb[6].mxu0 %vm25_vm1, %v565_v26  ;;  %1351 = vmatmul.mubr.msk.f32.vlgmr.msra.gmra.mrb[6].mxu1 %vm25_vm1, %v565_v26 }
 0x216   :  { %1447 = vmatpush3.bf16.msra.mxu0 %v1584_v16  ;;  %1361 = vmatprep.mubr.msk.f32.mxu0 %vm1513_vm0, %v1514_v4 }
 0x217   :  { %1448 = vmatprep.subr.bf16.mxu0 %v1512_v0  ;;  %1453 = vmatpush3.bf16.msra.mxu1 %v1547_v5 }
 0x218   :  { %1454 = vmatprep.subr.bf16.mxu1 %v1512_v0  ;;  %1372 = vmatprep.mubr.msk.f32.mxu1 %vm1513_vm0, %v1514_v4 }
 0x21a   :  { %1450 = vmatpush3.bf16.msra.mxu0 %v1598_v19 }
 0x21b   :  { %1457 = vmatprep.subr.bf16.mxu0 %v1512_v0  ;;  %1456 = vmatpush3.bf16.msra.mxu1 %v1570_v12 }
 0x21c   :  { %1463 = vmatprep.subr.bf16.mxu1 %v1512_v0 }
 0x21d   :  { %1362 = vmatmul.mubr.msk.f32.vlgmr.msra.gmra.mrb[8].mxu0 %vm25_vm1, %v565_v26 }
 0x21e   :  { %1459 = vmatpush3.bf16.msra.mxu0 %v1561_v9  ;;  %1383 = vmatprep.mubr.msk.f32.mxu0 %vm1513_vm0, %v1514_v4 }
 0x21f   :  { %1460 = vmatprep.subr.bf16.mxu0 %v1512_v0 }
 0x222   :  { %1462 = vmatpush3.bf16.msra.mxu0 %v1574_v13 }
 0x2e8   :  { %v648_v5 = vpop.f32.mrb[6].mxu0  ;;  %v729_v28 = vpop.f32.mrb[6].mxu1 }
 0x2e9   :  { %v649_v12 = vadd.f32 %v1621_v20, %v648_v5  ;;  %v1341_v29 = vpop.f32.mrb[7].mxu0  ;;  %v1352_v30 = vpop.f32.mrb[7].mxu1  ;;  %v730_v31 = vadd.f32 %v1626_v21, %v729_v28 }
 0x2eb   :  { %v816_v9 = vadd.f32 %v1177_v27, %v649_v12  ;;  %v825_v34 = vadd.f32 %v1179_v32, %v730_v31 }
 0x2ed   :  { %v1178_v33 = vmul.f32 -1.442695, %v816_v9  ;;  %v1180_v36 = vmul.f32 -1.442695, %v825_v34 }
 0x2ef   :  { %1492 = vpow2.f32 %v1178_v33 }
 0x2f0   :  { %v810_v13 = vpop.f32.mrb[8].mxu0  ;;  %1494 = vpow2.f32 %v1180_v36 }
 0x2f1   :  { %v1363_v35 = vpop.f32.mrb[9].mxu0  ;;  %v811_v42 = vadd.f32 %v1639_v39, %v810_v13 }
 0x2f9   :  { %v1493_v37 = vpop.eup %1492 }
 0x2fa   :  { %v820_v38 = vadd.f32 1.0, %v1493_v37  ;;  %v1495_v40 = vpop.eup %1494 }
 0x2fb   :  { %v829_v41 = vadd.f32 1.0, %v1495_v40 }
 0x2fc   :  { %1496 = vrcp.f32 %v820_v38 }
 0x2fd   :  { %1498 = vrcp.f32 %v829_v41 }
 0x306   :  { %v1497_v43 = vpop.eup %1496 }
 0x307   :  { %v834_v45 = vmul.f32 %v1497_v43, %v811_v42  ;;  %v1499_v47 = vpop.eup %1498 }
 0x308   :  { %v837_v48 = vsub.f32 1.0, %v1499_v47  ;;  %v839_v51 = vmul.f32 %v1499_v47, %v565_v26 }
 0x309   :  { %v835_v46 = vadd.f32 %v1181_v44, %v834_v45 }
 0x30b   :  { %1500 = vtanh.f32 %v835_v46 }
 0x315   :  { %v1501_v49 = vpop.eup %1500 }
 0x316   :  { %v838_v50 = vmul.f32 %v1501_v49, %v837_v48 }
 0x318   :  { %v840_v52 = vadd.f32 %v839_v51, %v838_v50 }
 0x31a   :  { %1182 = vst.msk [vmem:[%s1749_s3 + $0x4] sm:$0x3] %vm291_vm2, %v840_v52  ;;  %1373 = vmatmul.mubr.msk.f32.vlgmr.msra.gmra.mrb[8].mxu1 %vm25_vm1, %v840_v52  ;;  %1384 = vmatmul.mubr.msk.f32.vlgmr.msra.gmra.mrb[10].mxu0 %vm25_vm1, %v840_v52 }
 0x31b   :  { %1465 = vmatpush3.bf16.msra.mxu1 %v1584_v16  ;;  %1394 = vmatprep.mubr.msk.f32.mxu1 %vm1513_vm0, %v1514_v4 }
 0x31c   :  { %1466 = vmatprep.subr.bf16.mxu1 %v1512_v0  ;;  %v1201_v0 = vld [vmem:[%s1748_s0 + $0x14] sm:$0x3] }
 0x31f   :  { %1468 = vmatpush3.bf16.msra.mxu1 %v1598_v19 }
 0x322   :  { %1395 = vmatmul.mubr.msk.f32.vlgmr.msra.gmra.mrb[10].mxu1 %vm25_vm1, %v840_v52 }
 0x3ed   :  { %v923_v53 = vpop.f32.mrb[8].mxu1  ;;  %v1004_v55 = vpop.f32.mrb[10].mxu0 }
 0x3ee   :  { %v924_v56 = vadd.f32 %v1621_v20, %v923_v53  ;;  %v1374_v57 = vpop.f32.mrb[9].mxu1  ;;  %v1385_v58 = vpop.f32.mrb[11].mxu0  ;;  %v1005_v16 = vadd.f32 %v1626_v21, %v1004_v55 }
 0x3f0   :  { %v1091_v59 = vadd.f32 %v1199_v54, %v924_v56  ;;  %v1100_v19 = vadd.f32 %v1201_v0, %v1005_v16 }
 0x3f2   :  { %v1200_v4 = vmul.f32 -1.442695, %v1091_v59  ;;  %v1202_v62 = vmul.f32 -1.442695, %v1100_v19 }
 0x3f4   :  { %1502 = vpow2.f32 %v1200_v4 }
 0x3f5   :  { %v1085_v60 = vpop.f32.mrb[10].mxu1  ;;  %1504 = vpow2.f32 %v1202_v62 }
 0x3f6   :  { %v1396_v61 = vpop.f32.mrb[11].mxu1  ;;  %v1086_v3 = vadd.f32 %v1639_v39, %v1085_v60 }
 0x3fe   :  { %v1503_v63 = vpop.eup %1502 }
 0x3ff   :  { %v1095_v1 = vadd.f32 1.0, %v1503_v63  ;;  %v1505_v20 = vpop.eup %1504 }
 0x400   :  { %v1104_v2 = vadd.f32 1.0, %v1505_v20 }
 0x401   :  { %1506 = vrcp.f32 %v1095_v1 }
 0x402   :  { %1508 = vrcp.f32 %v1104_v2 }
 0x40b   :  { %v1507_v21 = vpop.eup %1506 }
 0x40c   :  { %v1109_v7 = vmul.f32 %v1507_v21, %v1086_v3  ;;  %v1509_v10 = vpop.eup %1508 }
 0x40d   :  { %v1112_v11 = vsub.f32 1.0, %v1509_v10  ;;  %v1114_v15 = vmul.f32 %v1509_v10, %v840_v52 }
 0x40e   :  { %v1110_v8 = vadd.f32 %v1203_v6, %v1109_v7 }
 0x410   :  { %1510 = vtanh.f32 %v1110_v8 }
 0x41a   :  { %v1511_v14 = vpop.eup %1510 }
 0x41b   :  { %v1113_v17 = vmul.f32 %v1511_v14, %v1112_v11 }
 0x41d   :  { %v1115_v18 = vadd.f32 %v1114_v15, %v1113_v17 }
 0x41f   :  { %1204 = vst.msk [vmem:[%s1749_s3 + $0x6] sm:$0x3] %vm291_vm2, %v1115_v18 }

// kernel: fwd.3
= control target key start
LH: loop header
LB: loop body
LE: loop exit
PB: predicated region body
PF: predicated region fallthrough
CT: control target
= control target key end

     0   :  { %vm32_vm0 = vcmask 1043456   ;;  %v650_v0 = vmov 0.0   ;;  %vm651_vm1 = vmmov 0   ;;  %vm28_vm2 = vcmask 64512   ;;  %s755_s2 = inlined_call_operand.vmem [shape: bf16[3,8,16], index: 2, kind: input, shape index: {}]   ;;  %s756_s0 = inlined_call_operand.vmem [shape: bf16[16,8], index: 0, kind: input, shape index: {}]   ;;  %s757_s1 = inlined_call_operand.vmem [shape: bf16[1,2,16,16], index: 1, kind: input, shape index: {}]   ;;  %s758_s3 = inlined_call_operand.vmem [shape: bf16[3,16,16], index: 3, kind: input, shape index: {}]   ;;  %s759_s4 = inlined_call_operand.vmem [shape: f32[16,16], index: 4, kind: output, shape index: {}]  }
   0x1   :  { %566 = vmatprep.subr.bf16.mxu1 %v650_v0  ;;  %v22_v1 = vld [vmem:[%s755_s2] sm:$0xf]  ;;  %568 = vmatprep.mubr.msk.bf16.mxu1 %vm651_vm1, %v650_v0  ;;  %v528_v4 = vld [vmem:[%s755_s2 + $0x4] sm:$0xf]  ;;  %v522_v13 = vld [vmem:[%s755_s2 + $0x8] sm:$0xf] }
   0x2   :  { %v34_v2 = vsel %vm32_vm0, %v22_v1, 0  ;;  %v644_v3 = vld [vmem:[%s756_s0] sm:$0xff]   ;;  %584 = vmatprep.subr.bf16.mxu0 %v650_v0  ;;  %586 = vmatprep.mubr.msk.bf16.mxu0 %vm651_vm1, %v650_v0  ;;  %v177_v5 = vsel %vm32_vm0, %v528_v4, 0  ;;  %vm85_vm3 = vcmask 130048   ;;  %v131_v18 = vsel %vm32_vm0, %v522_v13, 0  ;;  %v646_v19 = vld [vmem:[%s757_s1 + $0x8] sm:$0xff]  }
   0x3   :  { %567 = vmatpush3.bf16.msra.mxu1 %v34_v2  ;;  %585 = vmatpush3.bf16.msra.mxu0 %v177_v5  ;;  %v645_v15 = vld [vmem:[%s757_s1] sm:$0xff]   ;;  %v648_v21 = vld [vmem:[%s758_s3 + $0x8] sm:$0xff]   ;;  %v649_v39 = vld [vmem:[%s758_s3 + $0x10] sm:$0xff]  }
   0x4   :  { %572 = vmatprep.subr.bf16.mxu1 %v650_v0  ;;  %596 = vmatprep.subr.bf16.mxu0 %v650_v0  ;;  %v647_v20 = vld [vmem:[%s758_s3] sm:$0xff]  }
   0x6   :  { %569 = vmatmul.mubr.msk.bf16.vlgmr.msra.gmra.mrb[0].mxu1 %vm28_vm2, %v644_v3  ;;  %587 = vmatmul.mubr.msk.bf16.vlgmr.msra.gmra.mrb[0].mxu0 %vm28_vm2, %v644_v3 }
   0x7   :  { %574 = vmatprep.mubr.msk.bf16.mxu1 %vm651_vm1, %v650_v0  ;;  %598 = vmatprep.mubr.msk.bf16.mxu0 %vm651_vm1, %v650_v0 }
   0x8   :  { %597 = vmatpush3.bf16.msra.mxu0 %v647_v20 }
   0x9   :  { %602 = vmatprep.subr.bf16.mxu0 %v650_v0 }
  0xd9   :  { %v70_v6 = vpop.f32.mrb[0].mxu1  ;;  %v213_v8 = vpop.f32.mrb[0].mxu0 }
  0xda   :  { %v570_v7 = vpop.f32.mrb[1].mxu1  ;;  %v588_v10 = vpop.f32.mrb[1].mxu0 }
  0xdb   :  { %v73_v9 = vpop.f32.mrb[2].mxu1  ;;  %v216_v14 = vpop.f32.mrb[2].mxu0 }
  0xdc   :  { %v79_v11 = vpack.c.bf16 %v73_v9, %v70_v6  ;;  %v571_v12 = vpop.f32.mrb[3].mxu1  ;;  %v223_v16 = vpack.c.bf16 %v216_v14, %v213_v8  ;;  %v589_v17 = vpop.f32.mrb[3].mxu0 }
  0xde   :  { %573 = vmatpush3.bf16.msra.mxu1 %v79_v11 }
  0xdf   :  { %578 = vmatprep.subr.bf16.mxu1 %v650_v0 }
  0xe1   :  { %575 = vmatmul.mubr.msk.bf16.vlgmr.msra.gmra.mrb[4].mxu1 %vm85_vm3, %v645_v15 }
  0xe2   :  { %579 = vmatpush3.bf16.msra.mxu1 %v131_v18  ;;  %580 = vmatprep.mubr.msk.bf16.mxu1 %vm651_vm1, %v650_v0 }
  0xe3   :  { %590 = vmatprep.subr.bf16.mxu1 %v650_v0 }
  0xed   :  { %581 = vmatmul.mubr.msk.bf16.vlgmr.msra.gmra.mrb[4].mxu1 %vm28_vm2, %v644_v3 }
  0xee   :  { %591 = vmatpush3.bf16.msra.mxu1 %v223_v16  ;;  %592 = vmatprep.mubr.msk.bf16.mxu1 %vm651_vm1, %v650_v0 }
  0xef   :  { %614 = vmatprep.subr.bf16.mxu1 %v650_v0 }
  0xf9   :  { %593 = vmatmul.mubr.msk.bf16.vlgmr.msra.gmra.mrb[4].mxu1 %vm85_vm3, %v646_v19 }
  0xfa   :  { %616 = vmatprep.mubr.msk.bf16.mxu1 %vm651_vm1, %v650_v0  ;;  %615 = vmatpush3.bf16.msra.mxu1 %v648_v21 }
 0x1cc   :  { %v266_v22 = vpop.f32.mrb[4].mxu1 }
 0x1cd   :  { %v594_v23 = vpop.f32.mrb[5].mxu1  ;;  %v275_v25 = vmax.f32 %v266_v22, 0.0 }
 0x1ce   :  { %v269_v24 = vpop.f32.mrb[6].mxu1 }
 0x1cf   :  { %v276_v26 = vmax.f32 %v269_v24, 0.0  ;;  %v595_v27 = vpop.f32.mrb[7].mxu1 }
 0x1d1   :  { %v277_v28 = vpack.c.bf16 %v276_v26, %v275_v25 }
 0x1d3   :  { %599 = vmatmul.mubr.msk.bf16.vlgmr.msra.gmra.mrb[4].mxu0 %vm85_vm3, %v277_v28  ;;  %617 = vmatmul.mubr.msk.bf16.vlgmr.msra.gmra.mrb[8].mxu1 %vm85_vm3, %v277_v28 }
 0x1d4   :  { %604 = vmatprep.mubr.msk.bf16.mxu0 %vm651_vm1, %v650_v0 }
 0x2a6   :  { %v326_v29 = vpop.f32.mrb[4].mxu0  ;;  %v465_v30 = vpop.f32.mrb[8].mxu1 }
 0x2a7   :  { %v600_v31 = vpop.f32.mrb[5].mxu0  ;;  %v618_v32 = vpop.f32.mrb[9].mxu1 }
 0x2a8   :  { %v329_v33 = vpop.f32.mrb[6].mxu0  ;;  %v468_v34 = vpop.f32.mrb[10].mxu1 }
 0x2a9   :  { %v333_v35 = vpack.c.bf16 %v329_v33, %v326_v29  ;;  %v472_v36 = vpack.c.bf16 %v468_v34, %v465_v30  ;;  %v601_v37 = vpop.f32.mrb[7].mxu0  ;;  %v619_v38 = vpop.f32.mrb[11].mxu1 }
 0x2ab   :  { %603 = vmatpush3.bf16.msra.mxu0 %v333_v35 }
 0x2ac   :  { %608 = vmatprep.subr.bf16.mxu0 %v650_v0 }
 0x2ae   :  { %605 = vmatmul.mubr.msk.bf16.vlgmr.msra.gmra.mrb[8].mxu0 %vm85_vm3, %v645_v15 }
 0x2af   :  { %609 = vmatpush3.bf16.msra.mxu0 %v649_v39  ;;  %610 = vmatprep.mubr.msk.bf16.mxu0 %vm651_vm1, %v650_v0 }
 0x2b0   :  { %620 = vmatprep.subr.bf16.mxu0 %v650_v0 }
 0x2ba   :  { %611 = vmatmul.mubr.msk.bf16.vlgmr.msra.gmra.mrb[8].mxu0 %vm85_vm3, %v277_v28 }
 0x2bb   :  { %621 = vmatpush3.bf16.msra.mxu0 %v472_v36  ;;  %622 = vmatprep.mubr.msk.bf16.mxu0 %vm651_vm1, %v650_v0 }
 0x2c6   :  { %623 = vmatmul.mubr.msk.bf16.vlgmr.msra.gmra.mrb[8].mxu0 %vm85_vm3, %v646_v19 }
 0x399   :  { %v507_v40 = vpop.f32.mrb[8].mxu0 }
 0x39a   :  { %516 = vst.msk [vmem:[%s759_s4] sm:$0xff] %vm85_vm3, %v507_v40  ;;  %v624_v41 = vpop.f32.mrb[9].mxu0 }
 0x39b   :  { %v510_v42 = vpop.f32.mrb[10].mxu0 }
 0x39c   :  { %517 = vst.msk [vmem:[%s759_s4 + $0x8] sm:$0xff] %vm85_vm3, %v510_v42  ;;  %v625_v43 = vpop.f32.mrb[11].mxu0 }

// kernel: fwd.4
= control target key start
LH: loop header
LB: loop body
LE: loop exit
PB: predicated region body
PF: predicated region fallthrough
CT: control target
= control target key end

     0   :  { %vm62_vm0 = vcmask 1043456   ;;  %vm49_vm1 = vcmask 64512   ;;  %vm163_vm2 = vcmask 523264   ;;  %vm520_vm3 = vcmask 130048   ;;  %s1476_s2 = inlined_call_operand.vmem [shape: bf16[3,8,16], index: 2, kind: input, shape index: {}]   ;;  %s1477_s0 = inlined_call_operand.vmem [shape: bf16[64,8], index: 0, kind: input, shape index: {}]   ;;  %s1478_s1 = inlined_call_operand.vmem [shape: bf16[1,2,64,64], index: 1, kind: input, shape index: {}]   ;;  %s1479_s3 = inlined_call_operand.vmem [shape: bf16[3,16,16], index: 3, kind: input, shape index: {}]   ;;  %s1480_s4 = inlined_call_operand.vmem [shape: f32[8,16], index: 4, kind: output, shape index: {}]  }
   0x1   :  { %v28_v0 = vld [vmem:[%s1476_s2] sm:$0xf]  ;;  %v1325_v3 = vld [vmem:[%s1477_s0 + $0x8] sm:$0xff]   ;;  %v1332_v4 = vld [vmem:[%s1477_s0 + $0x10] sm:$0xff]   ;;  %vm962_vm4 = vcmask 1041409   ;;  %vm964_vm5 = vcmask 1042434  }
   0x2   :  { %1269 = vmatprep.subr.msk.bf16.mxu1 %vm62_vm0, %v28_v0  ;;  %v64_v1 = vsel %vm62_vm0, %v28_v0, 0  ;;  %v1320_v2 = vld [vmem:[%s1477_s0] sm:$0xff]   ;;  %v1348_v7 = vld [vmem:[%s1477_s0 + $0x18] sm:$0xff]   ;;  %v982_v34 = vld [vmem:[%s1476_s2 + $0x8] sm:$0xf]  ;;  %vm966_vm6 = vcmask 1043459  }
   0x3   :  { %1114 = vmatpush3.bf16.msra.mxu1 %v64_v1  ;;  %1115 = vmatprep.mubr.msk.bf16.mxu1 %vm49_vm1, %v1320_v2  ;;  %v1003_v5 = vld [vmem:[%s1476_s2 + $0x4] sm:$0xf]  ;;  %v1374_v35 = vld [vmem:[%s1478_s1 + $0x8] sm:$0xff]   ;;  %v1379_v36 = vld [vmem:[%s1478_s1 + $0x10] sm:$0xff]   ;;  %v242_v37 = vsel %vm62_vm0, %v982_v34, 0  ;;  %vm968_vm7 = vcmask 1044484  }
   0x4   :  { %1151 = vmatprep.mubr.msk.bf16.mxu0 %vm49_vm1, %v1320_v2  ;;  %1271 = vmatprep.subr.msk.bf16.mxu0 %vm62_vm0, %v1003_v5  ;;  %v312_v6 = vsel %vm62_vm0, %v1003_v5, 0  ;;  %v1361_v8 = vld [vmem:[%s1478_s1] sm:$0xff]   ;;  %v1390_v38 = vld [vmem:[%s1478_s1 + $0x18] sm:$0xff]   ;;  %v1412_v40 = vld [vmem:[%s1478_s1 + $0x28] sm:$0xff]   ;;  %vm970_vm8 = vcmask 1045509   ;;  %vm972_vm9 = vcmask 1046534  }
   0x5   :  { %1150 = vmatpush3.bf16.msra.mxu0 %v312_v6  ;;  %v1284_v9 = vld [vmem:[%s1479_s3] sm:$0xff]   ;;  %v1417_v41 = vld [vmem:[%s1478_s1 + $0x30] sm:$0xff]   ;;  %v1426_v42 = vld [vmem:[%s1478_s1 + $0x38] sm:$0xff]   ;;  %vm974_vm10 = vcmask 1047559  }
   0x6   :  { %1116 = vmatmul.mubr.msk.bf16.vlgmr.msra.gmra.mrb[0].mxu1 %vm49_vm1, %v1325_v3  ;;  %1175 = vmatprep.subr.bf16.mxu0 %v1284_v9  ;;  %v1403_v39 = vld [vmem:[%s1478_s1 + $0x20] sm:$0xff]   ;;  %v1285_v43 = vld [vmem:[%s1479_s3 + $0x8] sm:$0xff]  }
   0x7   :  { %1119 = vmatprep.mubr.msk.bf16.mxu1 %vm49_vm1, %v1332_v4 }
   0x8   :  { %1152 = vmatmul.mubr.msk.bf16.vlgmr.msra.gmra.mrb[0].mxu0 %vm49_vm1, %v1325_v3 }
   0x9   :  { %1155 = vmatprep.mubr.msk.bf16.mxu0 %vm49_vm1, %v1332_v4  ;;  %1176 = vmatpush3.bf16.msra.mxu0 %v1284_v9 }
   0xe   :  { %1120 = vmatmul.mubr.msk.bf16.gmra.mrb[4].mxu1 %vm49_vm1, %v1348_v7 }
   0xf   :  { %1131 = vmatprep.mubr.msk.bf16.mxu1 %vm163_vm2, %v1361_v8 }
  0x10   :  { %1156 = vmatmul.mubr.msk.bf16.gmra.mrb[4].mxu0 %vm49_vm1, %v1348_v7 }
  0xd9   :  { %v1117_v10 = vpop.f32.mrb[0].mxu1 }
  0xda   :  { %v100_v11 = vpop.f32.mrb[1].mxu1 }
  0xdb   :  { %v1118_v12 = vpop.f32.mrb[2].mxu1  ;;  %v1153_v16 = vpop.f32.mrb[0].mxu0 }
  0xdc   :  { %v140_v13 = vpack.c.bf16 %v1118_v12, %v1117_v10  ;;  %v103_v14 = vpop.f32.mrb[3].mxu1  ;;  %v348_v17 = vpop.f32.mrb[1].mxu0 }
  0xdd   :  { %v139_v15 = vpack.c.bf16 %v103_v14, %v100_v11  ;;  %v1154_v18 = vpop.f32.mrb[2].mxu0 }
  0xde   :  { %v389_v19 = vpack.c.bf16 %v1154_v18, %v1153_v16  ;;  %v351_v20 = vpop.f32.mrb[3].mxu0 }
  0xdf   :  { %1123 = vmatprep.subr.bf16.mxu1 %v139_v15  ;;  %v388_v22 = vpack.c.bf16 %v351_v20, %v348_v17 }
  0xe0   :  { %1124 = vmatpush3.bf16.msra.mxu1 %v139_v15 }
  0xe1   :  { %v1121_v21 = vpop.f32.mrb[4].mxu1  ;;  %1125 = vmatprep.subr.bf16.mxu1 %v140_v13 }
  0xe2   :  { %v116_v23 = vpop.f32.mrb[5].mxu1 }
  0xe3   :  { %v1122_v24 = vpop.f32.mrb[6].mxu1  ;;  %v1157_v28 = vpop.f32.mrb[4].mxu0 }
  0xe4   :  { %v142_v25 = vpack.c.bf16 %v1122_v24, %v1121_v21  ;;  %v119_v26 = vpop.f32.mrb[7].mxu1  ;;  %1126 = vmatpush3.bf16.msra.mxu1 %v140_v13  ;;  %v364_v29 = vpop.f32.mrb[5].mxu0  ;;  %v1286_v24 = vld [vmem:[%s1479_s3 + $0x10] sm:$0xff]  }
  0xe5   :  { %v141_v27 = vpack.c.bf16 %v119_v26, %v116_v23  ;;  %v1158_v30 = vpop.f32.mrb[6].mxu0 }
  0xe6   :  { %v391_v31 = vpack.c.bf16 %v1158_v30, %v1157_v28  ;;  %v367_v32 = vpop.f32.mrb[7].mxu0 }
  0xe7   :  { %1127 = vmatprep.subr.bf16.mxu1 %v141_v27  ;;  %v390_v33 = vpack.c.bf16 %v367_v32, %v364_v29 }
  0xe8   :  { %1128 = vmatpush3.bf16.msra.mxu1 %v141_v27 }
  0xe9   :  { %1129 = vmatprep.subr.bf16.mxu1 %v142_v25 }
  0xec   :  { %1130 = vmatpush3.bf16.msra.mxu1 %v142_v25 }
  0xed   :  { %1270 = vmatprep.subr.msk.bf16.mxu1 %vm62_vm0, %v982_v34 }
  0xef   :  { %1132 = vmatmul.mubr.msk.bf16.vlgmr.msra.gmra.mrb[8].mxu1 %vm163_vm2, %v1374_v35 }
  0xf0   :  { %1140 = vmatpush3.bf16.msra.mxu1 %v242_v37  ;;  %1135 = vmatprep.mubr.msk.bf16.mxu1 %vm163_vm2, %v1379_v36 }
  0xf1   :  { %1159 = vmatprep.subr.bf16.mxu1 %v388_v22 }
  0xf7   :  { %1136 = vmatmul.mubr.msk.bf16.gmra.mrb[12].mxu1 %vm163_vm2, %v1390_v38 }
  0xf8   :  { %1141 = vmatprep.mubr.msk.bf16.mxu1 %vm49_vm1, %v1320_v2 }
  0xff   :  { %1142 = vmatmul.mubr.msk.bf16.vlgmr.msra.gmra.mrb[8].mxu1 %vm49_vm1, %v1325_v3 }
 0x100   :  { %1160 = vmatpush3.bf16.msra.mxu1 %v388_v22  ;;  %1145 = vmatprep.mubr.msk.bf16.mxu1 %vm49_vm1, %v1332_v4 }
 0x101   :  { %1161 = vmatprep.subr.bf16.mxu1 %v389_v19 }
 0x104   :  { %1162 = vmatpush3.bf16.msra.mxu1 %v389_v19 }
 0x105   :  { %1163 = vmatprep.subr.bf16.mxu1 %v390_v33 }
 0x107   :  { %1146 = vmatmul.mubr.msk.bf16.gmra.mrb[12].mxu1 %vm49_vm1, %v1348_v7 }
 0x108   :  { %1164 = vmatpush3.bf16.msra.mxu1 %v390_v33  ;;  %1167 = vmatprep.mubr.msk.bf16.mxu1 %vm163_vm2, %v1403_v39 }
 0x109   :  { %1165 = vmatprep.subr.bf16.mxu1 %v391_v31 }
 0x10c   :  { %1166 = vmatpush3.bf16.msra.mxu1 %v391_v31 }
 0x10d   :  { %1211 = vmatprep.subr.bf16.mxu1 %v1285_v43 }
 0x10f   :  { %1168 = vmatmul.mubr.msk.bf16.vlgmr.msra.gmra.mrb[8].mxu1 %vm163_vm2, %v1412_v40 }
 0x110   :  { %1171 = vmatprep.mubr.msk.bf16.mxu1 %vm163_vm2, %v1417_v41  ;;  %1212 = vmatpush3.bf16.msra.mxu1 %v1285_v43 }
 0x117   :  { %1172 = vmatmul.mubr.msk.bf16.gmra.mrb[12].mxu1 %vm163_vm2, %v1426_v42 }
 0x1e2   :  { %v1169_v44 = vpop.f32.mrb[8].mxu1 }
 0x1e3   :  { %v458_v45 = vpop.f32.mrb[9].mxu1  ;;  %v499_v47 = vmax.f32 %v1169_v44, 0.0 }
 0x1e4   :  { %v1170_v46 = vpop.f32.mrb[10].mxu1  ;;  %v497_v50 = vmax.f32 %v458_v45, 0.0 }
 0x1e5   :  { %v500_v48 = vmax.f32 %v1170_v46, 0.0  ;;  %v461_v49 = vpop.f32.mrb[11].mxu1 }
 0x1e6   :  { %v498_v51 = vmax.f32 %v461_v49, 0.0 }
 0x1e7   :  { %v506_v52 = vpack.c.bf16 %v500_v48, %v499_v47 }
 0x1e8   :  { %v505_v53 = vpack.c.bf16 %v498_v51, %v497_v50 }
 0x1ea   :  { %v1173_v54 = vpop.f32.mrb[12].mxu1  ;;  %1177 = vmatprep.mubr.msk.bf16.mxu0 %vm520_vm3, %v505_v53  ;;  %1213 = vmatprep.mubr.msk.bf16.mxu1 %vm520_vm3, %v505_v53 }
 0x1eb   :  { %v474_v55 = vpop.f32.mrb[13].mxu1  ;;  %1178 = vmatmul.mubr.msk.bf16.vlgmr.msra.gmra.mrb[8].mxu0 %vm520_vm3, %v506_v52  ;;  %1214 = vmatmul.mubr.msk.bf16.vlgmr.msra.gmra.mrb[16].mxu1 %vm520_vm3, %v506_v52  ;;  %v503_v57 = vmax.f32 %v1173_v54, 0.0 }
 0x1ec   :  { %v1174_v56 = vpop.f32.mrb[14].mxu1  ;;  %v501_v60 = vmax.f32 %v474_v55, 0.0 }
 0x1ed   :  { %v504_v58 = vmax.f32 %v1174_v56, 0.0  ;;  %v477_v59 = vpop.f32.mrb[15].mxu1 }
 0x1ee   :  { %v502_v61 = vmax.f32 %v477_v59, 0.0 }
 0x1ef   :  { %v508_v62 = vpack.c.bf16 %v504_v58, %v503_v57 }
 0x1f0   :  { %v507_v63 = vpack.c.bf16 %v502_v61, %v501_v60 }
 0x1f2   :  { %1181 = vmatprep.mubr.msk.bf16.mxu0 %vm520_vm3, %v507_v63  ;;  %1217 = vmatprep.mubr.msk.bf16.mxu1 %vm520_vm3, %v507_v63 }
 0x1f3   :  { %1182 = vmatmul.mubr.msk.bf16.gmra.mrb[12].mxu0 %vm520_vm3, %v508_v62  ;;  %1218 = vmatmul.mubr.msk.bf16.gmra.mrb[20].mxu1 %vm520_vm3, %v508_v62 }
 0x1f4   :  { %1193 = vmatprep.mubr.msk.bf16.mxu0 %vm163_vm2, %v1361_v8 }
 0x2be   :  { %v1179_v0 = vpop.f32.mrb[8].mxu0  ;;  %v1215_v1 = vpop.f32.mrb[16].mxu1 }
 0x2bf   :  { %v567_v2 = vpop.f32.mrb[9].mxu0  ;;  %v781_v3 = vpop.f32.mrb[17].mxu1 }
 0x2c0   :  { %v1180_v4 = vpop.f32.mrb[10].mxu0  ;;  %v1216_v5 = vpop.f32.mrb[18].mxu1 }
 0x2c1   :  { %v599_v6 = vpack.c.bf16 %v1180_v4, %v1179_v0  ;;  %v813_v7 = vpack.c.bf16 %v1216_v5, %v1215_v1  ;;  %v570_v9 = vpop.f32.mrb[11].mxu0  ;;  %v784_v10 = vpop.f32.mrb[19].mxu1 }
 0x2c2   :  { %v598_v11 = vpack.c.bf16 %v570_v9, %v567_v2  ;;  %v812_v12 = vpack.c.bf16 %v784_v10, %v781_v3 }
 0x2c4   :  { %1185 = vmatprep.subr.bf16.mxu0 %v598_v11 }
 0x2c5   :  { %1186 = vmatpush3.bf16.msra.mxu0 %v598_v11 }
 0x2c6   :  { %v1183_v13 = vpop.f32.mrb[12].mxu0  ;;  %1187 = vmatprep.subr.bf16.mxu0 %v599_v6  ;;  %v1219_v14 = vpop.f32.mrb[20].mxu1 }
 0x2c7   :  { %v583_v15 = vpop.f32.mrb[13].mxu0  ;;  %v797_v16 = vpop.f32.mrb[21].mxu1 }
 0x2c8   :  { %v1184_v8 = vpop.f32.mrb[14].mxu0  ;;  %v1220_v17 = vpop.f32.mrb[22].mxu1 }
 0x2c9   :  { %v601_v18 = vpack.c.bf16 %v1184_v8, %v1183_v13  ;;  %v815_v19 = vpack.c.bf16 %v1220_v17, %v1219_v14  ;;  %v586_v20 = vpop.f32.mrb[15].mxu0  ;;  %1188 = vmatpush3.bf16.msra.mxu0 %v599_v6  ;;  %v800_v21 = vpop.f32.mrb[23].mxu1 }
 0x2ca   :  { %v600_v22 = vpack.c.bf16 %v586_v20, %v583_v15  ;;  %v814_v23 = vpack.c.bf16 %v800_v21, %v797_v16 }
 0x2cc   :  { %1189 = vmatprep.subr.bf16.mxu0 %v600_v22 }
 0x2cd   :  { %1190 = vmatpush3.bf16.msra.mxu0 %v600_v22 }
 0x2ce   :  { %1191 = vmatprep.subr.bf16.mxu0 %v601_v18 }
 0x2d1   :  { %1192 = vmatpush3.bf16.msra.mxu0 %v601_v18 }
 0x2d2   :  { %1201 = vmatprep.subr.bf16.mxu0 %v1286_v24 }
 0x2d4   :  { %1194 = vmatmul.mubr.msk.bf16.vlgmr.msra.gmra.mrb[16].mxu0 %vm163_vm2, %v1374_v35 }
 0x2d5   :  { %1202 = vmatpush3.bf16.msra.mxu0 %v1286_v24  ;;  %1197 = vmatprep.mubr.msk.bf16.mxu0 %vm163_vm2, %v1379_v36 }
 0x2d6   :  { %1221 = vmatprep.subr.bf16.mxu0 %v812_v12 }
 0x2dc   :  { %1198 = vmatmul.mubr.msk.bf16.gmra.mrb[20].mxu0 %vm163_vm2, %v1390_v38 }
 0x2dd   :  { %1203 = vmatprep.mubr.msk.bf16.mxu0 %vm520_vm3, %v505_v53 }
 0x2e4   :  { %1204 = vmatmul.mubr.msk.bf16.vlgmr.msra.gmra.mrb[16].mxu0 %vm520_vm3, %v506_v52 }
 0x2e5   :  { %1222 = vmatpush3.bf16.msra.mxu0 %v812_v12  ;;  %1207 = vmatprep.mubr.msk.bf16.mxu0 %vm520_vm3, %v507_v63 }
 0x2e6   :  { %1223 = vmatprep.subr.bf16.mxu0 %v813_v7 }
 0x2e9   :  { %1224 = vmatpush3.bf16.msra.mxu0 %v813_v7 }
 0x2ea   :  { %1225 = vmatprep.subr.bf16.mxu0 %v814_v23 }
 0x2ec   :  { %1208 = vmatmul.mubr.msk.bf16.gmra.mrb[20].mxu0 %vm520_vm3, %v508_v62 }
 0x2ed   :  { %1226 = vmatpush3.bf16.msra.mxu0 %v814_v23  ;;  %1229 = vmatprep.mubr.msk.bf16.mxu0 %vm163_vm2, %v1403_v39 }
 0x2ee   :  { %1227 = vmatprep.subr.bf16.mxu0 %v815_v19 }
 0x2f1   :  { %1228 = vmatpush3.bf16.msra.mxu0 %v815_v19 }
 0x2f4   :  { %1230 = vmatmul.mubr.msk.bf16.vlgmr.msra.gmra.mrb[16].mxu0 %vm163_vm2, %v1412_v40 }
 0x2f5   :  { %1233 = vmatprep.mubr.msk.bf16.mxu0 %vm163_vm2, %v1417_v41 }
 0x2fc   :  { %1234 = vmatmul.mubr.msk.bf16.gmra.mrb[20].mxu0 %vm163_vm2, %v1426_v42 }
 0x3c7   :  { %v1231_v25 = vpop.f32.mrb[16].mxu0 }
 0x3c8   :  { %v903_v26 = vsel %vm520_vm3, %v1231_v25, 0.0  ;;  %v850_v27 = vpop.f32.mrb[17].mxu0 }
 0x3c9   :  { %v904_v28 = vrot.slane %v903_v26, 4  ;;  %v889_v29 = vsel %vm520_vm3, %v850_v27, 0.0  ;;  %v1232_v30 = vpop.f32.mrb[18].mxu0 }
 0x3ca   :  { %v890_v31 = vrot.slane %v889_v29, 4  ;;  %v910_v32 = vsel %vm520_vm3, %v1232_v30, 0.0  ;;  %v853_v33 = vpop.f32.mrb[19].mxu0 }
 0x3cb   :  { %v905_v34 = vadd.f32 %v904_v28, %v903_v26  ;;  %v911_v35 = vrot.slane %v910_v32, 4  ;;  %v896_v36 = vsel %vm520_vm3, %v853_v33, 0.0 }
 0x3cc   :  { %v891_v37 = vadd.f32 %v890_v31, %v889_v29  ;;  %v897_v38 = vrot.slane %v896_v36, 4 }
 0x3cd   :  { %v906_v39 = vrot.slane %v905_v34, 2  ;;  %v912_v40 = vadd.f32 %v911_v35, %v910_v32 }
 0x3ce   :  { %v892_v41 = vrot.slane %v891_v37, 2  ;;  %v898_v42 = vadd.f32 %v897_v38, %v896_v36 }
 0x3cf   :  { %v907_v43 = vadd.f32 %v906_v39, %v905_v34  ;;  %v913_v44 = vrot.slane %v912_v40, 2  ;;  %v1235_v45 = vpop.f32.mrb[20].mxu0 }
 0x3d0   :  { %v893_v46 = vadd.f32 %v892_v41, %v891_v37  ;;  %v899_v47 = vrot.slane %v898_v42, 2  ;;  %v931_v48 = vsel %vm520_vm3, %v1235_v45, 0.0  ;;  %v866_v49 = vpop.f32.mrb[21].mxu0 }
 0x3d1   :  { %v908_v50 = vrot.slane %v907_v43, 1  ;;  %v914_v51 = vadd.f32 %v913_v44, %v912_v40  ;;  %v932_v52 = vrot.slane %v931_v48, 4  ;;  %v917_v53 = vsel %vm520_vm3, %v866_v49, 0.0  ;;  %v1236_v54 = vpop.f32.mrb[22].mxu0 }
 0x3d2   :  { %v894_v55 = vrot.slane %v893_v46, 1  ;;  %v900_v56 = vadd.f32 %v899_v47, %v898_v42  ;;  %v918_v57 = vrot.slane %v917_v53, 4  ;;  %v938_v58 = vsel %vm520_vm3, %v1236_v54, 0.0  ;;  %v869_v59 = vpop.f32.mrb[23].mxu0 }
 0x3d3   :  { %v915_v60 = vrot.slane %v914_v51, 1  ;;  %v933_v61 = vadd.f32 %v932_v52, %v931_v48  ;;  %v939_v62 = vrot.slane %v938_v58, 4  ;;  %v924_v2 = vsel %vm520_vm3, %v869_v59, 0.0 }
 0x3d4   :  { %v895_v63 = vadd.f32 %v894_v55, %v893_v46  ;;  %v901_v0 = vrot.slane %v900_v56, 1  ;;  %v919_v1 = vadd.f32 %v918_v57, %v917_v53  ;;  %v909_v3 = vadd.f32 %v908_v50, %v907_v43 }
 0x3d5   :  { %v934_v4 = vrot.slane %v933_v61, 2  ;;  %v940_v5 = vadd.f32 %v939_v62, %v938_v58  ;;  %v916_v6 = vadd.f32 %v915_v60, %v914_v51  ;;  %v925_v10 = vrot.slane %v924_v2, 4 }
 0x3d6   :  { %v902_v7 = vadd.f32 %v901_v0, %v900_v56  ;;  %v920_v9 = vrot.slane %v919_v1, 2  ;;  %v946_v13 = vmul.f32 0.125, %v895_v63  ;;  %v948_v8 = vmul.f32 0.125, %v909_v3 }
 0x3d7   :  { %v935_v11 = vadd.f32 %v934_v4, %v933_v61  ;;  %v941_v12 = vrot.slane %v940_v5, 2  ;;  %v926_v16 = vadd.f32 %v925_v10, %v924_v2  ;;  %v949_v18 = vmul.f32 0.125, %v916_v6 }
 0x3d8   :  { %v947_v14 = vmul.f32 0.125, %v902_v7  ;;  %v921_v15 = vadd.f32 %v920_v9, %v919_v1 }
 0x3d9   :  { %v942_v17 = vadd.f32 %v941_v12, %v940_v5  ;;  %v927_v21 = vrot.slane %v926_v16, 2  ;;  %v936_v23 = vrot.slane %v935_v11, 1 }
 0x3da   :  { %v963_v19 = vsel %vm962_vm4, %v947_v14, %v946_v13  ;;  %v922_v20 = vrot.slane %v921_v15, 1 }
 0x3db   :  { %v965_v22 = vsel %vm964_vm5, %v948_v8, %v963_v19  ;;  %v943_v26 = vrot.slane %v942_v17, 1  ;;  %v928_v27 = vadd.f32 %v927_v21, %v926_v16  ;;  %v937_v30 = vadd.f32 %v936_v23, %v935_v11 }
 0x3dc   :  { %v923_v24 = vadd.f32 %v922_v20, %v921_v15  ;;  %v967_v25 = vsel %vm966_vm6, %v949_v18, %v965_v22 }
 0x3dd   :  { %v929_v29 = vrot.slane %v928_v27, 1  ;;  %v944_v32 = vadd.f32 %v943_v26, %v942_v17  ;;  %v952_v35 = vmul.f32 0.125, %v937_v30 }
 0x3de   :  { %v950_v28 = vmul.f32 0.125, %v923_v24 }
 0x3df   :  { %v930_v33 = vadd.f32 %v929_v29, %v928_v27  ;;  %v953_v36 = vmul.f32 0.125, %v944_v32 }
 0x3e0   :  { %v969_v31 = vsel %vm968_vm7, %v950_v28, %v967_v25 }
 0x3e1   :  { %v951_v34 = vmul.f32 0.125, %v930_v33 }
 0x3e3   :  { %v971_v37 = vsel %vm970_vm8, %v951_v34, %v969_v31 }
 0x3e4   :  { %v973_v38 = vsel %vm972_vm9, %v952_v35, %v971_v37 }
 0x3e5   :  { %v975_v39 = vsel %vm974_vm10, %v953_v36, %v973_v38 }
 0x3e6   :  { %977 = vst.msk [vmem:[%s1480_s4] sm:$0xff] %vm520_vm3, %v975_v39 }

</bundles_post_ra>
